<compile_context>
chip_gen: v7x
topology: tpu7x:2x2x1
jax: 0.10.0
libtpu: 0.0.40
codegen_flags: <defaults>
</compile_context>

<pallas_src>
import jax
import jax.numpy as jnp
import numpy as np
from jax.experimental import pallas as pl
from jax.experimental.pallas import tpu as pltpu

KERNEL_SIZE = 3


def _convlstm_kernel(p_ref, w_ref, b_ref, c_ref, h_out_ref, c_out_ref):
    """One tile of pixels: gates = W @ patches (MXU), then LSTM gating (VPU/EUP).

    p_ref : (Kp, tileN)   im2col patches for this tile (contraction-major)
    w_ref : (4*Ch, Kp)    folded conv weight (resident across the grid)
    b_ref : (4*Ch, 1)     bias
    c_ref : (Ch, tileN)   previous cell state
    h_out_ref, c_out_ref : (Ch, tileN)
    """
    ch = c_ref.shape[0]

    # Single deep matmul on the MXU, f32 accumulation.
    gates = jnp.dot(w_ref[...], p_ref[...], preferred_element_type=jnp.float32)
    gates = gates + b_ref[...]                    # (4*Ch, tileN) + (4*Ch, 1)

    # Gate order matches torch.split(gates, hidden, dim=1): i, f, g, o.
    # These are sublane slices of a lane-dense tile (no cross-lane shuffles).
    i = jax.nn.sigmoid(gates[0 * ch:1 * ch, :])
    f = jax.nn.sigmoid(gates[1 * ch:2 * ch, :])
    g = jnp.tanh(gates[2 * ch:3 * ch, :])
    o = jax.nn.sigmoid(gates[3 * ch:4 * ch, :])

    c_next = f * c_ref[...] + i * g
    c_out_ref[...] = c_next
    h_out_ref[...] = o * jnp.tanh(c_next)


def conv_lstm_cell(x_nchw, h_nchw, c_nchw, w_oihw, bias, *,
                   tile_n=256, compute_dtype=jnp.float32):
    """Mirrors ConvLSTMCell.forward(x, h, c): NCHW activations, OIHW weight."""
    B, _, H, W = x_nchw.shape
    c_out, c_in, k, _ = w_oihw.shape
    assert k == KERNEL_SIZE
    assert tile_n % 128 == 0, "tile_n must be a multiple of 128 (lane width)"
    ch = c_out // 4
    pad = k // 2
    m = B * H * W

    # ---- wrapper glue: im2col, channels-first -----------------------------
    combined = jnp.concatenate([x_nchw, h_nchw], axis=1).astype(jnp.float32)
    xpad = jnp.pad(combined, ((0, 0), (0, 0), (pad, pad), (pad, pad)))
    taps = [xpad[:, :, ky:ky + H, kx:kx + W]
            for ky in range(k) for kx in range(k)]
    patches = jnp.stack(taps, axis=0)                   # (K*K, B, Cin, H, W)
    patches = jnp.transpose(patches, (0, 2, 1, 3, 4))   # (K*K, Cin, B, H, W)
    patches = patches.reshape(k * k * c_in, m)          # (Kdim, M)

    # Conv weight folded to (4*Ch, K*K*Cin) in tap-major / channel-minor
    # order, matching the patch row ordering above.
    w2d = jnp.transpose(w_oihw, (0, 2, 3, 1)).reshape(c_out, k * k * c_in)
    b2d = bias.reshape(c_out, 1).astype(jnp.float32)

    # Previous cell state, channels-first flattened: (Ch, M).
    c2d = jnp.transpose(c_nchw, (1, 0, 2, 3)).reshape(ch, m).astype(jnp.float32)

    # Pad contraction dim to a sublane multiple, pixel dim to the tile size.
    # Zero padding is exact (padded products are zero; padded pixels dropped).
    kdim = k * k * c_in
    kp = ((kdim + 7) // 8) * 8
    mp = ((m + tile_n - 1) // tile_n) * tile_n
    patches = jnp.pad(patches, ((0, kp - kdim), (0, mp - m)))
    w2d = jnp.pad(w2d, ((0, 0), (0, kp - kdim)))
    c2d = jnp.pad(c2d, ((0, 0), (0, mp - m)))

    patches = patches.astype(compute_dtype)
    w2d = w2d.astype(compute_dtype)

    grid = (mp // tile_n,)
    itemsize = jnp.dtype(compute_dtype).itemsize
    cost = pl.CostEstimate(
        flops=2 * mp * kp * c_out,
        transcendentals=5 * mp * ch,                     # 3 sigmoid + 2 tanh
        bytes_accessed=(kp * mp * itemsize + c_out * kp * itemsize
                        + 3 * ch * mp * 4 + c_out * 4),
    )

    h2d, c2d_next = pl.pallas_call(
        _convlstm_kernel,
        grid=grid,
        in_specs=[
            pl.BlockSpec((kp, tile_n), lambda i: (0, i)),   # patches tile
            pl.BlockSpec((c_out, kp), lambda i: (0, 0)),    # weight (resident)
            pl.BlockSpec((c_out, 1), lambda i: (0, 0)),     # bias (resident)
            pl.BlockSpec((ch, tile_n), lambda i: (0, i)),   # c_prev tile
        ],
        out_specs=(
            pl.BlockSpec((ch, tile_n), lambda i: (0, i)),   # h_next tile
            pl.BlockSpec((ch, tile_n), lambda i: (0, i)),   # c_next tile
        ),
        out_shape=(
            jax.ShapeDtypeStruct((ch, mp), jnp.float32),
            jax.ShapeDtypeStruct((ch, mp), jnp.float32),
        ),
        compiler_params=pltpu.CompilerParams(
            dimension_semantics=("parallel",),
            vmem_limit_bytes=32 * 1024 * 1024,
        ),
        cost_estimate=cost,
    )(patches, w2d, b2d, c2d)

    # (Ch, Mp) -> NCHW (glue)
    h_next = jnp.transpose(h2d[:, :m].reshape(ch, B, H, W), (1, 0, 2, 3))
    c_next = jnp.transpose(c2d_next[:, :m].reshape(ch, B, H, W), (1, 0, 2, 3))
    return h_next, c_next


def _reference(x, h, c, w_oihw, bias, hidden):
    """Pure-JAX reference matching the PyTorch module (NCHW)."""
    combined = jnp.concatenate([x, h], axis=1)
    gates = jax.lax.conv_general_dilated(
        combined, w_oihw, window_strides=(1, 1), padding="SAME",
        dimension_numbers=("NCHW", "OIHW", "NCHW"))
    gates = gates + bias[None, :, None, None]
    i = jax.nn.sigmoid(gates[:, 0 * hidden:1 * hidden])
    f = jax.nn.sigmoid(gates[:, 1 * hidden:2 * hidden])
    g = jnp.tanh(gates[:, 2 * hidden:3 * hidden])
    o = jax.nn.sigmoid(gates[:, 3 * hidden:4 * hidden])
    c_next = f * c + i * g
    h_next = o * jnp.tanh(c_next)
    return h_next, c_next


if __name__ == "__main__":
    # Small, deterministic shapes consistent with the module.
    B, IN_CH, HID_CH, HW = 2, 4, 32, 16
    CIN = IN_CH + HID_CH
    COUT = 4 * HID_CH

    key = jax.random.PRNGKey(0)
    kx, kh, kc, kw, kb = jax.random.split(key, 5)

    x = jax.random.normal(kx, (B, IN_CH, HW, HW), jnp.float32)
    h = jax.random.normal(kh, (B, HID_CH, HW, HW), jnp.float32)
    c = jax.random.normal(kc, (B, HID_CH, HW, HW), jnp.float32)

    # Deterministic Conv2d-style init (uniform in +/- 1/sqrt(fan_in)).
    bound = 1.0 / np.sqrt(CIN * KERNEL_SIZE * KERNEL_SIZE)
    w = jax.random.uniform(kw, (COUT, CIN, KERNEL_SIZE, KERNEL_SIZE),
                           jnp.float32, -bound, bound)
    b = jax.random.uniform(kb, (COUT,), jnp.float32, -bound, bound)

    h_next, c_next = jax.jit(conv_lstm_cell)(x, h, c, w, b)
    jax.block_until_ready((h_next, c_next))

    h_ref, c_ref = _reference(x, h, c, w, b, HID_CH)
    assert h_next.shape == (B, HID_CH, HW, HW)
    assert c_next.shape == (B, HID_CH, HW, HW)
    np.testing.assert_allclose(np.asarray(h_next), np.asarray(h_ref),
                               atol=1e-4, rtol=1e-4)
    np.testing.assert_allclose(np.asarray(c_next), np.asarray(c_ref),
                               atol=1e-4, rtol=1e-4)

    print("KERNEL_OK")
</pallas_src>

<mosaic_0001>
module attributes {stable_mosaic.version = 11 : i64} {
  func.func @_convlstm_kernel(%arg0: i32, %arg1: memref<328x256xf32, #tpu.memory_space<vmem>>, %arg2: memref<128x328xf32, #tpu.memory_space<vmem>>, %arg3: memref<128x1xf32, #tpu.memory_space<vmem>>, %arg4: memref<32x256xf32, #tpu.memory_space<vmem>>, %arg5: memref<32x256xf32, #tpu.memory_space<vmem>>, %arg6: memref<32x256xf32, #tpu.memory_space<vmem>>) attributes {dimension_semantics = [#tpu.dimension_semantics<parallel>], iteration_bounds = array<i64: 2>, scalar_prefetch = 0 : i64, scratch_operands = 0 : i64, tpu.core_type = #tpu.core_type<tc>, window_params = [{transform_indices = @transform_0, window_bounds = array<i64: 328, 256>}, {pipeline_mode = #tpu.pipeline_mode<synchronous>, transform_indices = @transform_1, window_bounds = array<i64: 128, 328>}, {pipeline_mode = #tpu.pipeline_mode<synchronous>, transform_indices = @transform_2, window_bounds = array<i64: 128, 1>}, {transform_indices = @transform_3, window_bounds = array<i64: 32, 256>}, {transform_indices = @transform_4, window_bounds = array<i64: 32, 256>}, {transform_indices = @transform_5, window_bounds = array<i64: 32, 256>}]} {
    %c0 = arith.constant 0 : index
    %c0_0 = arith.constant 0 : index
    %0 = vector.load %arg2[%c0, %c0_0] : memref<128x328xf32, #tpu.memory_space<vmem>>, vector<128x328xf32>
    %c0_1 = arith.constant 0 : index
    %c0_2 = arith.constant 0 : index
    %1 = vector.load %arg1[%c0_1, %c0_2] : memref<328x256xf32, #tpu.memory_space<vmem>>, vector<328x256xf32>
    %cst = arith.constant dense<0.000000e+00> : vector<128x256xf32>
    %2 = tpu.matmul %0, %1, %cst {dimension_numbers = #tpu.dot_dimension_numbers<[1], [0], [0], [1], [0, 0, 1, 1], [], []>} : vector<128x328xf32>, vector<328x256xf32>, vector<128x256xf32> -> vector<128x256xf32>
    %c0_3 = arith.constant 0 : index
    %c0_4 = arith.constant 0 : index
    %3 = vector.load %arg3[%c0_3, %c0_4] : memref<128x1xf32, #tpu.memory_space<vmem>>, vector<128x1xf32>
    %4 = vector.broadcast %3 : vector<128x1xf32> to vector<128x256xf32>
    %5 = arith.addf %2, %4 : vector<128x256xf32>
    %6 = vector.extract_strided_slice %5 {offsets = [0, 0], sizes = [32, 256], strides = [1, 1]} : vector<128x256xf32> to vector<32x256xf32>
    %7 = arith.negf %6 : vector<32x256xf32>
    %8 = math.exp %7 : vector<32x256xf32>
    %cst_5 = arith.constant 1.000000e+00 : f32
    %9 = vector.broadcast %cst_5 : f32 to vector<32x256xf32>
    %10 = arith.addf %9, %8 : vector<32x256xf32>
    %11 = arith.divf %9, %10 : vector<32x256xf32>
    %12 = vector.extract_strided_slice %5 {offsets = [32, 0], sizes = [32, 256], strides = [1, 1]} : vector<128x256xf32> to vector<32x256xf32>
    %13 = arith.negf %12 : vector<32x256xf32>
    %14 = math.exp %13 : vector<32x256xf32>
    %cst_6 = arith.constant 1.000000e+00 : f32
    %15 = vector.broadcast %cst_6 : f32 to vector<32x256xf32>
    %16 = arith.addf %15, %14 : vector<32x256xf32>
    %17 = arith.divf %15, %16 : vector<32x256xf32>
    %18 = vector.extract_strided_slice %5 {offsets = [64, 0], sizes = [32, 256], strides = [1, 1]} : vector<128x256xf32> to vector<32x256xf32>
    %19 = math.tanh %18 : vector<32x256xf32>
    %20 = vector.extract_strided_slice %5 {offsets = [96, 0], sizes = [32, 256], strides = [1, 1]} : vector<128x256xf32> to vector<32x256xf32>
    %21 = arith.negf %20 : vector<32x256xf32>
    %22 = math.exp %21 : vector<32x256xf32>
    %cst_7 = arith.constant 1.000000e+00 : f32
    %23 = vector.broadcast %cst_7 : f32 to vector<32x256xf32>
    %24 = arith.addf %23, %22 : vector<32x256xf32>
    %25 = arith.divf %23, %24 : vector<32x256xf32>
    %c0_8 = arith.constant 0 : index
    %c0_9 = arith.constant 0 : index
    %26 = vector.load %arg4[%c0_8, %c0_9] : memref<32x256xf32, #tpu.memory_space<vmem>>, vector<32x256xf32>
    %27 = arith.mulf %17, %26 : vector<32x256xf32>
    %28 = arith.mulf %11, %19 : vector<32x256xf32>
    %29 = arith.addf %27, %28 : vector<32x256xf32>
    %c0_10 = arith.constant 0 : index
    %c0_11 = arith.constant 0 : index
    %30 = vector.load %arg6[%c0_10, %c0_11] : memref<32x256xf32, #tpu.memory_space<vmem>>, vector<32x256xf32>
    tpu.vector_store %arg6[%c0_10, %c0_11], %29 {strides = array<i32>} : memref<32x256xf32, #tpu.memory_space<vmem>>, vector<32x256xf32>,
    %31 = math.tanh %29 : vector<32x256xf32>
    %32 = arith.mulf %25, %31 : vector<32x256xf32>
    %c0_12 = arith.constant 0 : index
    %c0_13 = arith.constant 0 : index
    %33 = vector.load %arg5[%c0_12, %c0_13] : memref<32x256xf32, #tpu.memory_space<vmem>>, vector<32x256xf32>
    tpu.vector_store %arg5[%c0_12, %c0_13], %32 {strides = array<i32>} : memref<32x256xf32, #tpu.memory_space<vmem>>, vector<32x256xf32>,
    return
  }
  func.func @transform_0(%arg0: i32) -> (i32, i32) {
    %c0_i32 = arith.constant 0 : i32
    %c0_i32_0 = arith.constant 0 : i32
    return %c0_i32, %arg0 : i32, i32
  }
  func.func @transform_1(%arg0: i32) -> (i32, i32) {
    %c0_i32 = arith.constant 0 : i32
    %c0_i32_0 = arith.constant 0 : i32
    %c0_i32_1 = arith.constant 0 : i32
    return %c0_i32, %c0_i32_0 : i32, i32
  }
  func.func @transform_2(%arg0: i32) -> (i32, i32) {
    %c0_i32 = arith.constant 0 : i32
    %c0_i32_0 = arith.constant 0 : i32
    %c0_i32_1 = arith.constant 0 : i32
    return %c0_i32, %c0_i32_0 : i32, i32
  }
  func.func @transform_3(%arg0: i32) -> (i32, i32) {
    %c0_i32 = arith.constant 0 : i32
    %c0_i32_0 = arith.constant 0 : i32
    return %c0_i32, %arg0 : i32, i32
  }
  func.func @transform_4(%arg0: i32) -> (i32, i32) {
    %c0_i32 = arith.constant 0 : i32
    %c0_i32_0 = arith.constant 0 : i32
    return %c0_i32, %arg0 : i32, i32
  }
  func.func @transform_5(%arg0: i32) -> (i32, i32) {
    %c0_i32 = arith.constant 0 : i32
    %c0_i32_0 = arith.constant 0 : i32
    return %c0_i32, %arg0 : i32, i32
  }
}

</mosaic_0001>

<bundles_post_ra>
// kernel: conv_lstm_cell.1
= control target key start
LH: loop header
LB: loop body
LE: loop exit
PB: predicated region body
PF: predicated region fallthrough
CT: control target
= control target key end

     0   :  { %s1886_s18 = smov 0   ;;  %s1888_s19 = smov 0   ;;  %s2592_s0 = inlined_call_operand.vmem [shape: f32[328,512], index: 0, kind: input, shape index: {}]   ;;  %s2593_s1 = inlined_call_operand.vmem [shape: f32[128,328], index: 1, kind: input, shape index: {}]   ;;  %s2594_s2 = inlined_call_operand.vmem [shape: f32[128,1], index: 2, kind: input, shape index: {}]   ;;  %s2595_s3 = inlined_call_operand.vmem [shape: f32[32,512], index: 3, kind: input, shape index: {}]   ;;  %s2596_s4 = inlined_call_operand.vmem [shape: f32[32,512], index: 4, kind: output, shape index: {0}]   ;;  %s2597_s5 = inlined_call_operand.vmem [shape: f32[32,512], index: 5, kind: output, shape index: {1}]  }
   0x1   :  { %s1890_s20 = smov 0  }
   0x2 LB: > { %s1902_s21 = sadd.s32 4294967295, %s1852_s20   ;;  %s1905_s22 = sadd.s32 1, %s1852_s20   ;;  %s1852_s20 = sphi %s1890_s20, %s2602_s20   ;;  %s1848_s19 = sphi %s1888_s19, %s2601_s19   ;;  %s1844_s18 = sphi %s1886_s18, %s2600_s18  }
   0x3   : > { %s20_s23 = ssub.s32 %s1852_s20, %s1905_s22  ;;  %s23_s24 = sadd.s32 1, %s1848_s19 }
   0x4   : > { %p21_p0 = scmp.eq.s32.totalorder %s20_s23, 0  ;;  %p30_p1 = scmp.ne.s32.totalorder %s1848_s19, %s1844_s18 }
   0x5   : > { %p31_p2 = scmp.eq.s32.totalorder %s1852_s20, 0  ;;  %p128_p3 = scmp.eq.s32.totalorder %s1902_s21, 1 }
   0x6   : > { %s1915_s25 = scalar_select %p21_p0, %s1848_s19, %s23_s24  }
   0x7   : > { %p1917_p4 = por %p31_p2, %p30_p1  ;;  %p1921_p5 = por %p128_p3, %p30_p1 }
   0x8   : > { %p1466_p6 = scmp.ge.s32.totalorder %s1852_s20, 2 }
   0xa   : > { %182 = sbr.rel (%p1466_p6) target bundleno = 70 (0x46), region = 24 }
  0x11   : > { %185 = sbr.rel (!%p1917_p4) target bundleno = 62 (0x3e), region = 28  ;;  %s187_s28 = sand.u32 (%p1917_p4), 1, %s1848_s19  }
  0x12   : > { %s1524_s29 = sshll.u32 (%p1917_p4), %s1852_s20, 4  ;;  %s1672_s30 = smul.u32 (%p1917_p4), 656, %s187_s28 }
  0x13   : > { %s1933_s8 = scalar_lea.vmem (%p1917_p4), %s2592_s0, %s1524_s29 }
  0x14   : > { %v205_v0 = vld [vmem:[%s1933_s8] sm:$0xff] (%p1917_p4)  ;;  %v207_v1 = vld [vmem:[%s1933_s8 + $0x8] sm:$0xff] (%p1917_p4)  ;;  %s1941_s9 = scalar_lea.vmem (%p1917_p4), [#allocation2], %s1672_s30 }
  0x15   : > { %v209_v2 = vld [vmem:[%s1933_s8 + $0x20] sm:$0xff] (%p1917_p4)  ;;  %v211_v3 = vld [vmem:[%s1933_s8 + $0x28] sm:$0xff] (%p1917_p4)  ;;  %206 = vst [vmem:[%s1941_s9] sm:$0xff] (%p1917_p4), %v205_v0  ;;  %208 = vst [vmem:[%s1941_s9 + $0x8] sm:$0xff] (%p1917_p4), %v207_v1 }
  0x16   : > { %v213_v4 = vld [vmem:[%s1933_s8 + $0x40] sm:$0xff] (%p1917_p4)  ;;  %v215_v5 = vld [vmem:[%s1933_s8 + $0x48] sm:$0xff] (%p1917_p4)  ;;  %210 = vst [vmem:[%s1941_s9 + $0x10] sm:$0xff] (%p1917_p4), %v209_v2  ;;  %212 = vst [vmem:[%s1941_s9 + $0x18] sm:$0xff] (%p1917_p4), %v211_v3 }
  0x17   : > { %214 = vst [vmem:[%s1941_s9 + $0x20] sm:$0xff] (%p1917_p4), %v213_v4  ;;  %216 = vst [vmem:[%s1941_s9 + $0x28] sm:$0xff] (%p1917_p4), %v215_v5  ;;  %v217_v6 = vld [vmem:[%s1933_s8 + $0x60] sm:$0xff] (%p1917_p4)  ;;  %v219_v7 = vld [vmem:[%s1933_s8 + $0x68] sm:$0xff] (%p1917_p4) }
  0x18   : > { %v221_v8 = vld [vmem:[%s1933_s8 + $0x80] sm:$0xff]  ;;  %218 = vst [vmem:[%s1941_s9 + $0x30] sm:$0xff] %v217_v6  ;;  %220 = vst [vmem:[%s1941_s9 + $0x38] sm:$0xff] %v219_v7  ;;  %v223_v9 = vld [vmem:[%s1933_s8 + $0x88] sm:$0xff] }
  0x19   : > { %222 = vst [vmem:[%s1941_s9 + $0x40] sm:$0xff] %v221_v8  ;;  %v225_v10 = vld [vmem:[%s1933_s8 + $0xa0] sm:$0xff]  ;;  %v227_v11 = vld [vmem:[%s1933_s8 + $0xa8] sm:$0xff]  ;;  %224 = vst [vmem:[%s1941_s9 + $0x48] sm:$0xff] %v223_v9 }
  0x1a   : > { %226 = vst [vmem:[%s1941_s9 + $0x50] sm:$0xff] %v225_v10  ;;  %228 = vst [vmem:[%s1941_s9 + $0x58] sm:$0xff] %v227_v11  ;;  %v229_v12 = vld [vmem:[%s1933_s8 + $0xc0] sm:$0xff]  ;;  %v231_v13 = vld [vmem:[%s1933_s8 + $0xc8] sm:$0xff] }
  0x1b   : > { %v233_v14 = vld [vmem:[%s1933_s8 + $0xe0] sm:$0xff]  ;;  %230 = vst [vmem:[%s1941_s9 + $0x60] sm:$0xff] %v229_v12  ;;  %232 = vst [vmem:[%s1941_s9 + $0x68] sm:$0xff] %v231_v13  ;;  %v235_v15 = vld [vmem:[%s1933_s8 + $0xe8] sm:$0xff] }
  0x1c   : > { %234 = vst [vmem:[%s1941_s9 + $0x70] sm:$0xff] %v233_v14  ;;  %v237_v16 = vld [vmem:[%s1933_s8 + $0x100] sm:$0xff]  ;;  %v239_v17 = vld [vmem:[%s1933_s8 + $0x108] sm:$0xff]  ;;  %236 = vst [vmem:[%s1941_s9 + $0x78] sm:$0xff] %v235_v15 }
  0x1d   : > { %238 = vst [vmem:[%s1941_s9 + $0x80] sm:$0xff] %v237_v16  ;;  %240 = vst [vmem:[%s1941_s9 + $0x88] sm:$0xff] %v239_v17  ;;  %v241_v18 = vld [vmem:[%s1933_s8 + $0x120] sm:$0xff]  ;;  %v243_v19 = vld [vmem:[%s1933_s8 + $0x128] sm:$0xff] }
  0x1e   : > { %v245_v20 = vld [vmem:[%s1933_s8 + $0x140] sm:$0xff]  ;;  %242 = vst [vmem:[%s1941_s9 + $0x90] sm:$0xff] %v241_v18  ;;  %244 = vst [vmem:[%s1941_s9 + $0x98] sm:$0xff] %v243_v19  ;;  %v247_v21 = vld [vmem:[%s1933_s8 + $0x148] sm:$0xff] }
  0x1f   : > { %246 = vst [vmem:[%s1941_s9 + $0xa0] sm:$0xff] %v245_v20  ;;  %v249_v22 = vld [vmem:[%s1933_s8 + $0x160] sm:$0xff]  ;;  %v251_v23 = vld [vmem:[%s1933_s8 + $0x168] sm:$0xff]  ;;  %248 = vst [vmem:[%s1941_s9 + $0xa8] sm:$0xff] %v247_v21 }
  0x20   : > { %250 = vst [vmem:[%s1941_s9 + $0xb0] sm:$0xff] %v249_v22  ;;  %252 = vst [vmem:[%s1941_s9 + $0xb8] sm:$0xff] %v251_v23  ;;  %v253_v24 = vld [vmem:[%s1933_s8 + $0x180] sm:$0xff]  ;;  %v255_v25 = vld [vmem:[%s1933_s8 + $0x188] sm:$0xff] }
  0x21   : > { %v257_v26 = vld [vmem:[%s1933_s8 + $0x1a0] sm:$0xff]  ;;  %254 = vst [vmem:[%s1941_s9 + $0xc0] sm:$0xff] %v253_v24  ;;  %256 = vst [vmem:[%s1941_s9 + $0xc8] sm:$0xff] %v255_v25  ;;  %v259_v27 = vld [vmem:[%s1933_s8 + $0x1a8] sm:$0xff] }
  0x22   : > { %258 = vst [vmem:[%s1941_s9 + $0xd0] sm:$0xff] %v257_v26  ;;  %v261_v28 = vld [vmem:[%s1933_s8 + $0x1c0] sm:$0xff]  ;;  %v263_v29 = vld [vmem:[%s1933_s8 + $0x1c8] sm:$0xff]  ;;  %260 = vst [vmem:[%s1941_s9 + $0xd8] sm:$0xff] %v259_v27 }
  0x23   : > { %262 = vst [vmem:[%s1941_s9 + $0xe0] sm:$0xff] %v261_v28  ;;  %264 = vst [vmem:[%s1941_s9 + $0xe8] sm:$0xff] %v263_v29  ;;  %v265_v30 = vld [vmem:[%s1933_s8 + $0x1e0] sm:$0xff]  ;;  %v267_v31 = vld [vmem:[%s1933_s8 + $0x1e8] sm:$0xff] }
  0x24   : > { %v269_v32 = vld [vmem:[%s1933_s8 + $0x200] sm:$0xff]  ;;  %266 = vst [vmem:[%s1941_s9 + $0xf0] sm:$0xff] %v265_v30  ;;  %268 = vst [vmem:[%s1941_s9 + $0xf8] sm:$0xff] %v267_v31  ;;  %v271_v33 = vld [vmem:[%s1933_s8 + $0x208] sm:$0xff] }
  0x25   : > { %270 = vst [vmem:[%s1941_s9 + $0x100] sm:$0xff] %v269_v32  ;;  %v273_v34 = vld [vmem:[%s1933_s8 + $0x220] sm:$0xff]  ;;  %v275_v35 = vld [vmem:[%s1933_s8 + $0x228] sm:$0xff]  ;;  %272 = vst [vmem:[%s1941_s9 + $0x108] sm:$0xff] %v271_v33 }
  0x26   : > { %274 = vst [vmem:[%s1941_s9 + $0x110] sm:$0xff] %v273_v34  ;;  %276 = vst [vmem:[%s1941_s9 + $0x118] sm:$0xff] %v275_v35  ;;  %v277_v36 = vld [vmem:[%s1933_s8 + $0x240] sm:$0xff]  ;;  %v279_v37 = vld [vmem:[%s1933_s8 + $0x248] sm:$0xff] }
  0x27   : > { %v281_v38 = vld [vmem:[%s1933_s8 + $0x260] sm:$0xff]  ;;  %278 = vst [vmem:[%s1941_s9 + $0x120] sm:$0xff] %v277_v36  ;;  %280 = vst [vmem:[%s1941_s9 + $0x128] sm:$0xff] %v279_v37  ;;  %v283_v39 = vld [vmem:[%s1933_s8 + $0x268] sm:$0xff] }
  0x28   : > { %282 = vst [vmem:[%s1941_s9 + $0x130] sm:$0xff] %v281_v38  ;;  %v285_v40 = vld [vmem:[%s1933_s8 + $0x280] sm:$0xff]  ;;  %v287_v41 = vld [vmem:[%s1933_s8 + $0x288] sm:$0xff]  ;;  %284 = vst [vmem:[%s1941_s9 + $0x138] sm:$0xff] %v283_v39 }
  0x29   : > { %286 = vst [vmem:[%s1941_s9 + $0x140] sm:$0xff] %v285_v40  ;;  %288 = vst [vmem:[%s1941_s9 + $0x148] sm:$0xff] %v287_v41  ;;  %v289_v42 = vld [vmem:[%s1933_s8 + $0x2a0] sm:$0xff]  ;;  %v291_v43 = vld [vmem:[%s1933_s8 + $0x2a8] sm:$0xff] }
  0x2a   : > { %v293_v44 = vld [vmem:[%s1933_s8 + $0x2c0] sm:$0xff]  ;;  %290 = vst [vmem:[%s1941_s9 + $0x150] sm:$0xff] %v289_v42  ;;  %292 = vst [vmem:[%s1941_s9 + $0x158] sm:$0xff] %v291_v43  ;;  %v295_v45 = vld [vmem:[%s1933_s8 + $0x2c8] sm:$0xff] }
  0x2b   : > { %294 = vst [vmem:[%s1941_s9 + $0x160] sm:$0xff] %v293_v44  ;;  %v297_v46 = vld [vmem:[%s1933_s8 + $0x2e0] sm:$0xff]  ;;  %v299_v47 = vld [vmem:[%s1933_s8 + $0x2e8] sm:$0xff]  ;;  %296 = vst [vmem:[%s1941_s9 + $0x168] sm:$0xff] %v295_v45 }
  0x2c   : > { %298 = vst [vmem:[%s1941_s9 + $0x170] sm:$0xff] %v297_v46  ;;  %300 = vst [vmem:[%s1941_s9 + $0x178] sm:$0xff] %v299_v47  ;;  %v301_v48 = vld [vmem:[%s1933_s8 + $0x300] sm:$0xff]  ;;  %v303_v49 = vld [vmem:[%s1933_s8 + $0x308] sm:$0xff] }
  0x2d   : > { %v305_v50 = vld [vmem:[%s1933_s8 + $0x320] sm:$0xff]  ;;  %302 = vst [vmem:[%s1941_s9 + $0x180] sm:$0xff] %v301_v48  ;;  %304 = vst [vmem:[%s1941_s9 + $0x188] sm:$0xff] %v303_v49  ;;  %v307_v51 = vld [vmem:[%s1933_s8 + $0x328] sm:$0xff] }
  0x2e   : > { %306 = vst [vmem:[%s1941_s9 + $0x190] sm:$0xff] %v305_v50  ;;  %v309_v52 = vld [vmem:[%s1933_s8 + $0x340] sm:$0xff]  ;;  %v311_v53 = vld [vmem:[%s1933_s8 + $0x348] sm:$0xff]  ;;  %308 = vst [vmem:[%s1941_s9 + $0x198] sm:$0xff] %v307_v51 }
  0x2f   : > { %310 = vst [vmem:[%s1941_s9 + $0x1a0] sm:$0xff] %v309_v52  ;;  %312 = vst [vmem:[%s1941_s9 + $0x1a8] sm:$0xff] %v311_v53  ;;  %v313_v54 = vld [vmem:[%s1933_s8 + $0x360] sm:$0xff]  ;;  %v315_v55 = vld [vmem:[%s1933_s8 + $0x368] sm:$0xff] }
  0x30   : > { %v317_v56 = vld [vmem:[%s1933_s8 + $0x380] sm:$0xff]  ;;  %314 = vst [vmem:[%s1941_s9 + $0x1b0] sm:$0xff] %v313_v54  ;;  %316 = vst [vmem:[%s1941_s9 + $0x1b8] sm:$0xff] %v315_v55  ;;  %v319_v57 = vld [vmem:[%s1933_s8 + $0x388] sm:$0xff] }
  0x31   : > { %318 = vst [vmem:[%s1941_s9 + $0x1c0] sm:$0xff] %v317_v56  ;;  %v321_v58 = vld [vmem:[%s1933_s8 + $0x3a0] sm:$0xff]  ;;  %v323_v59 = vld [vmem:[%s1933_s8 + $0x3a8] sm:$0xff]  ;;  %320 = vst [vmem:[%s1941_s9 + $0x1c8] sm:$0xff] %v319_v57 }
  0x32   : > { %322 = vst [vmem:[%s1941_s9 + $0x1d0] sm:$0xff] %v321_v58  ;;  %324 = vst [vmem:[%s1941_s9 + $0x1d8] sm:$0xff] %v323_v59  ;;  %v325_v60 = vld [vmem:[%s1933_s8 + $0x3c0] sm:$0xff]  ;;  %v327_v61 = vld [vmem:[%s1933_s8 + $0x3c8] sm:$0xff] }
  0x33   : > { %v329_v62 = vld [vmem:[%s1933_s8 + $0x3e0] sm:$0xff]  ;;  %326 = vst [vmem:[%s1941_s9 + $0x1e0] sm:$0xff] %v325_v60  ;;  %328 = vst [vmem:[%s1941_s9 + $0x1e8] sm:$0xff] %v327_v61  ;;  %v331_v63 = vld [vmem:[%s1933_s8 + $0x3e8] sm:$0xff] }
  0x34   : > { %330 = vst [vmem:[%s1941_s9 + $0x1f0] sm:$0xff] %v329_v62  ;;  %v333_v0 = vld [vmem:[%s1933_s8 + $0x400] sm:$0xff]  ;;  %v335_v1 = vld [vmem:[%s1933_s8 + $0x408] sm:$0xff]  ;;  %332 = vst [vmem:[%s1941_s9 + $0x1f8] sm:$0xff] %v331_v63 }
  0x35   : > { %334 = vst [vmem:[%s1941_s9 + $0x200] sm:$0xff] %v333_v0  ;;  %336 = vst [vmem:[%s1941_s9 + $0x208] sm:$0xff] %v335_v1  ;;  %v337_v2 = vld [vmem:[%s1933_s8 + $0x420] sm:$0xff]  ;;  %v339_v3 = vld [vmem:[%s1933_s8 + $0x428] sm:$0xff] }
  0x36   : > { %v341_v4 = vld [vmem:[%s1933_s8 + $0x440] sm:$0xff]  ;;  %338 = vst [vmem:[%s1941_s9 + $0x210] sm:$0xff] %v337_v2  ;;  %340 = vst [vmem:[%s1941_s9 + $0x218] sm:$0xff] %v339_v3  ;;  %v343_v5 = vld [vmem:[%s1933_s8 + $0x448] sm:$0xff] }
  0x37   : > { %342 = vst [vmem:[%s1941_s9 + $0x220] sm:$0xff] %v341_v4  ;;  %v345_v6 = vld [vmem:[%s1933_s8 + $0x460] sm:$0xff]  ;;  %v347_v7 = vld [vmem:[%s1933_s8 + $0x468] sm:$0xff]  ;;  %344 = vst [vmem:[%s1941_s9 + $0x228] sm:$0xff] %v343_v5 }
  0x38   : > { %346 = vst [vmem:[%s1941_s9 + $0x230] sm:$0xff] %v345_v6  ;;  %348 = vst [vmem:[%s1941_s9 + $0x238] sm:$0xff] %v347_v7  ;;  %v349_v8 = vld [vmem:[%s1933_s8 + $0x480] sm:$0xff]  ;;  %v351_v9 = vld [vmem:[%s1933_s8 + $0x488] sm:$0xff] }
  0x39   : > { %v353_v10 = vld [vmem:[%s1933_s8 + $0x4a0] sm:$0xff]  ;;  %350 = vst [vmem:[%s1941_s9 + $0x240] sm:$0xff] %v349_v8  ;;  %352 = vst [vmem:[%s1941_s9 + $0x248] sm:$0xff] %v351_v9  ;;  %v355_v11 = vld [vmem:[%s1933_s8 + $0x4a8] sm:$0xff] }
  0x3a   : > { %354 = vst [vmem:[%s1941_s9 + $0x250] sm:$0xff] %v353_v10  ;;  %v357_v12 = vld [vmem:[%s1933_s8 + $0x4c0] sm:$0xff]  ;;  %v359_v13 = vld [vmem:[%s1933_s8 + $0x4c8] sm:$0xff]  ;;  %356 = vst [vmem:[%s1941_s9 + $0x258] sm:$0xff] %v355_v11 }
  0x3b   : > { %358 = vst [vmem:[%s1941_s9 + $0x260] sm:$0xff] %v357_v12  ;;  %360 = vst [vmem:[%s1941_s9 + $0x268] sm:$0xff] %v359_v13  ;;  %v361_v14 = vld [vmem:[%s1933_s8 + $0x4e0] sm:$0xff]  ;;  %v363_v15 = vld [vmem:[%s1933_s8 + $0x4e8] sm:$0xff] }
  0x3c   : > { %v365_v16 = vld [vmem:[%s1933_s8 + $0x500] sm:$0xff]  ;;  %362 = vst [vmem:[%s1941_s9 + $0x270] sm:$0xff] %v361_v14  ;;  %364 = vst [vmem:[%s1941_s9 + $0x278] sm:$0xff] %v363_v15  ;;  %v367_v17 = vld [vmem:[%s1933_s8 + $0x508] sm:$0xff] }
  0x3d   : > { %366 = vst [vmem:[%s1941_s9 + $0x280] sm:$0xff] %v365_v16  ;;  %368 = vst [vmem:[%s1941_s9 + $0x288] sm:$0xff] %v367_v17 }
  0x3e PF: > { %374 = sbr.rel (!%p1917_p4) target bundleno = 70 (0x46), region = 51  ;;  %s376_s10 = sand.u32 (%p1917_p4), 1, %s1848_s19  }
  0x3f   : > { %s1525_s11 = sshll.u32 (%p1917_p4), %s1852_s20, 4  ;;  %s1469_s12 = sshll.u32 (%p1917_p4), %s376_s10, 6 }
  0x40   : > { %s381_s15 = scalar_lea.vmem (%p1917_p4), %s2595_s3, %s1525_s11  ;;  %s378_s16 = scalar_lea.vmem (%p1917_p4), [#allocation3], %s1469_s12 }
  0x41   : > { %v394_v18 = vld [vmem:[%s381_s15] sm:$0xff] (%p1917_p4)  ;;  %v396_v19 = vld [vmem:[%s381_s15 + $0x8] sm:$0xff] (%p1917_p4) }
  0x42   : > { %v398_v20 = vld [vmem:[%s381_s15 + $0x20] sm:$0xff] (%p1917_p4)  ;;  %395 = vst [vmem:[%s378_s16] sm:$0xff] (%p1917_p4), %v394_v18  ;;  %397 = vst [vmem:[%s378_s16 + $0x8] sm:$0xff] (%p1917_p4), %v396_v19  ;;  %v400_v21 = vld [vmem:[%s381_s15 + $0x28] sm:$0xff] (%p1917_p4) }
  0x43   : > { %399 = vst [vmem:[%s378_s16 + $0x10] sm:$0xff] (%p1917_p4), %v398_v20  ;;  %v402_v22 = vld [vmem:[%s381_s15 + $0x40] sm:$0xff] (%p1917_p4)  ;;  %v404_v23 = vld [vmem:[%s381_s15 + $0x48] sm:$0xff] (%p1917_p4)  ;;  %401 = vst [vmem:[%s378_s16 + $0x18] sm:$0xff] (%p1917_p4), %v400_v21 }
  0x44   : > { %403 = vst [vmem:[%s378_s16 + $0x20] sm:$0xff] (%p1917_p4), %v402_v22  ;;  %405 = vst [vmem:[%s378_s16 + $0x28] sm:$0xff] (%p1917_p4), %v404_v23  ;;  %v406_v24 = vld [vmem:[%s381_s15 + $0x60] sm:$0xff] (%p1917_p4)  ;;  %v408_v25 = vld [vmem:[%s381_s15 + $0x68] sm:$0xff] (%p1917_p4) }
  0x45   : > { %407 = vst [vmem:[%s378_s16 + $0x30] sm:$0xff] %v406_v24  ;;  %409 = vst [vmem:[%s378_s16 + $0x38] sm:$0xff] %v408_v25 }
  0x46 PF: > { %p1472_p7 = scmp.ge.s32.totalorder %s1852_s20, 1  ;;  %p414_p8 = scmp.lt.s32.totalorder %s1852_s20, 3 }
  0x48   : > { %p415_p9 = pnand %p1472_p7, %p414_p8 }
  0x49   : > { %s421_s17 = sand.u32 (!%p415_p9), 1, %s1844_s18   ;;  %v467_v26 = vld [vmem:[%s2593_s1 + $0x8] sm:$0xff] (!%p415_p9)  ;;  %v1854_v27 = vmov (!%p415_p9), 0.0   ;;  %v1855_v31 = vmov (!%p415_p9), 0   ;;  %vm692_vm0 = vcmask (!%p415_p9), 588800  }
  0x4a   : > { %418 = sbr.rel (%p415_p9) target bundleno = 471 (0x1d7), region = 74  ;;  %805 = vmatprep.mubr.f32.mxu1 (!%p415_p9), %v467_v26  ;;  %966 = vmatprep.mubr.f32.mxu0 (!%p415_p9), %v1854_v27  ;;  %s2493_s30 = sshll.u32 (!%p415_p9), %s421_s17, 6 }
  0x4b   : > { %s1673_s26 = smul.u32 (!%p415_p9), 656, %s421_s17  ;;  %1700 = vset.pattern.permute.xlu0 (!%p415_p9), %v1855_v31  ;;  %1701 = vset.pattern.permute.xlu1 (!%p415_p9), %v1855_v31  ;;  %s2504_s18 = scalar_lea.vmem (!%p415_p9), [#allocation3], %s2493_s30 }
  0x4c   : > { %s2520_s17 = scalar_lea.vmem (!%p415_p9), [#allocation5], %s2493_s30  ;;  %s2544_s6 = scalar_lea.vmem (!%p415_p9), [#allocation4], %s2493_s30 }
  0x4d   : > { %s2117_s28 = scalar_lea.vmem (!%p415_p9), [#allocation2], %s1673_s26 }
  0x4e   : > { %v515_v28 = vld [vmem:[%s2117_s28 + $0x8] sm:$0xff] (!%p415_p9)  ;;  %v517_v29 = vld [vmem:[%s2117_s28 + $0x18] sm:$0xff] (!%p415_p9)  ;;  %v514_v30 = vld [vmem:[%s2117_s28] sm:$0xff] (!%p415_p9) }
  0x4f   : > { %v1528_v32 = vpack.c.bf16 (!%p415_p9), %v517_v29, %v515_v28  ;;  %v516_v33 = vld [vmem:[%s2117_s28 + $0x10] sm:$0xff] (!%p415_p9)  ;;  %v519_v34 = vld [vmem:[%s2117_s28 + $0x28] sm:$0xff] (!%p415_p9)  ;;  %v521_v35 = vld [vmem:[%s2117_s28 + $0x38] sm:$0xff] (!%p415_p9) }
  0x50   : > { %v1530_v36 = vpack.c.bf16 (!%p415_p9), %v516_v33, %v514_v30  ;;  %v1532_v37 = vpack.c.bf16 (!%p415_p9), %v521_v35, %v519_v34  ;;  %v518_v38 = vld [vmem:[%s2117_s28 + $0x20] sm:$0xff] (!%p415_p9)  ;;  %v520_v39 = vld [vmem:[%s2117_s28 + $0x30] sm:$0xff] (!%p415_p9)  ;;  %v523_v40 = vld [vmem:[%s2117_s28 + $0x48] sm:$0xff] (!%p415_p9) }
  0x51   : > { %1529 = vmatprep.subr.bf16.mxu1 %v1528_v32  ;;  %v525_v41 = vld [vmem:[%s2117_s28 + $0x58] sm:$0xff]  ;;  %v1534_v42 = vpack.c.bf16 %v520_v39, %v518_v38  ;;  %v522_v44 = vld [vmem:[%s2117_s28 + $0x40] sm:$0xff]  ;;  %v524_v45 = vld [vmem:[%s2117_s28 + $0x50] sm:$0xff] }
  0x52   : > { %1531 = vmatpush1.bf16.msra.mxu1 %v1530_v36  ;;  %v1536_v43 = vpack.c.bf16 %v525_v41, %v523_v40  ;;  %v527_v46 = vld [vmem:[%s2117_s28 + $0x68] sm:$0xff]  ;;  %v529_v47 = vld [vmem:[%s2117_s28 + $0x78] sm:$0xff]  ;;  %v1538_v48 = vpack.c.bf16 %v524_v45, %v522_v44  ;;  %v526_v50 = vld [vmem:[%s2117_s28 + $0x60] sm:$0xff] }
  0x53   : > { %1533 = vmatprep.subr.bf16.mxu1 %v1532_v37  ;;  %v1540_v49 = vpack.c.bf16 %v529_v47, %v527_v46  ;;  %v528_v51 = vld [vmem:[%s2117_s28 + $0x70] sm:$0xff]  ;;  %v531_v52 = vld [vmem:[%s2117_s28 + $0x88] sm:$0xff]  ;;  %v533_v53 = vld [vmem:[%s2117_s28 + $0x98] sm:$0xff] }
  0x54   : > { %v1542_v54 = vpack.c.bf16 %v528_v51, %v526_v50  ;;  %v1544_v55 = vpack.c.bf16 %v533_v53, %v531_v52  ;;  %v530_v56 = vld [vmem:[%s2117_s28 + $0x80] sm:$0xff]  ;;  %v532_v57 = vld [vmem:[%s2117_s28 + $0x90] sm:$0xff]  ;;  %v535_v58 = vld [vmem:[%s2117_s28 + $0xa8] sm:$0xff] }
  0x55   : > { %v537_v59 = vld [vmem:[%s2117_s28 + $0xb8] sm:$0xff]  ;;  %v1546_v60 = vpack.c.bf16 %v532_v57, %v530_v56  ;;  %v534_v61 = vld [vmem:[%s2117_s28 + $0xa0] sm:$0xff]  ;;  %v579_v62 = vld [vmem:[%s2117_s28 + $0x208] sm:$0xff] }
  0x56   : > { %1535 = vmatpush1.bf16.msra.mxu1 %v1534_v42  ;;  %v581_v63 = vld [vmem:[%s2117_s28 + $0x218] sm:$0xff]  ;;  %v1548_v0 = vpack.c.bf16 %v537_v59, %v535_v58  ;;  %v536_v1 = vld [vmem:[%s2117_s28 + $0xb0] sm:$0xff]  ;;  %v578_v3 = vld [vmem:[%s2117_s28 + $0x200] sm:$0xff] }
  0x57   : > { %1537 = vmatprep.subr.bf16.mxu1 %v1536_v43  ;;  %v1592_v2 = vpack.c.bf16 %v581_v63, %v579_v62  ;;  %v580_v4 = vld [vmem:[%s2117_s28 + $0x210] sm:$0xff]  ;;  %v539_v5 = vld [vmem:[%s2117_s28 + $0xc8] sm:$0xff]  ;;  %v541_v6 = vld [vmem:[%s2117_s28 + $0xd8] sm:$0xff]  ;;  %v1550_v10 = vpack.c.bf16 %v536_v1, %v534_v61 }
  0x58   : > { %v1594_v7 = vpack.c.bf16 %v580_v4, %v578_v3  ;;  %v583_v8 = vld [vmem:[%s2117_s28 + $0x228] sm:$0xff]  ;;  %v585_v9 = vld [vmem:[%s2117_s28 + $0x238] sm:$0xff]  ;;  %v538_v11 = vld [vmem:[%s2117_s28 + $0xc0] sm:$0xff]  ;;  %v1552_v15 = vpack.c.bf16 %v541_v6, %v539_v5 }
  0x59   : > { %1593 = vmatprep.subr.bf16.mxu0 %v1592_v2  ;;  %v1596_v12 = vpack.c.bf16 %v585_v9, %v583_v8  ;;  %v582_v13 = vld [vmem:[%s2117_s28 + $0x220] sm:$0xff]  ;;  %v584_v14 = vld [vmem:[%s2117_s28 + $0x230] sm:$0xff]  ;;  %v587_v18 = vld [vmem:[%s2117_s28 + $0x248] sm:$0xff] }
  0x5a   : > { %1539 = vmatpush1.bf16.msra.mxu1 %v1538_v48  ;;  %1595 = vmatpush1.bf16.msra.mxu0 %v1594_v7  ;;  %v540_v16 = vld [vmem:[%s2117_s28 + $0xd0] sm:$0xff]  ;;  %v1598_v17 = vpack.c.bf16 %v584_v14, %v582_v13  ;;  %v589_v19 = vld [vmem:[%s2117_s28 + $0x258] sm:$0xff]  ;;  %v543_v20 = vld [vmem:[%s2117_s28 + $0xe8] sm:$0xff] }
  0x5b   : > { %1541 = vmatprep.subr.bf16.mxu1 %v1540_v49  ;;  %v545_v21 = vld [vmem:[%s2117_s28 + $0xf8] sm:$0xff]  ;;  %1597 = vmatprep.subr.bf16.mxu0 %v1596_v12  ;;  %v1600_v22 = vpack.c.bf16 %v589_v19, %v587_v18  ;;  %v586_v23 = vld [vmem:[%s2117_s28 + $0x240] sm:$0xff]  ;;  %v588_v24 = vld [vmem:[%s2117_s28 + $0x250] sm:$0xff]  ;;  %v1554_v25 = vpack.c.bf16 %v540_v16, %v538_v11 }
  0x5c   : > { %v542_v26 = vld [vmem:[%s2117_s28 + $0xe0] sm:$0xff]  ;;  %v1602_v28 = vpack.c.bf16 %v588_v24, %v586_v23  ;;  %v591_v29 = vld [vmem:[%s2117_s28 + $0x268] sm:$0xff]  ;;  %v593_v30 = vld [vmem:[%s2117_s28 + $0x278] sm:$0xff]  ;;  %v1556_v31 = vpack.c.bf16 %v545_v21, %v543_v20 }
  0x5d   : > { %v544_v32 = vld [vmem:[%s2117_s28 + $0xf0] sm:$0xff]  ;;  %v1604_v33 = vpack.c.bf16 %v593_v30, %v591_v29  ;;  %v590_v34 = vld [vmem:[%s2117_s28 + $0x260] sm:$0xff]  ;;  %v547_v36 = vld [vmem:[%s2117_s28 + $0x108] sm:$0xff] }
  0x5e   : > { %1543 = vmatpush1.bf16.msra.mxu1 %v1542_v54  ;;  %1599 = vmatpush1.bf16.msra.mxu0 %v1598_v17  ;;  %v592_v35 = vld [vmem:[%s2117_s28 + $0x270] sm:$0xff]  ;;  %v549_v37 = vld [vmem:[%s2117_s28 + $0x118] sm:$0xff]  ;;  %v1558_v38 = vpack.c.bf16 %v544_v32, %v542_v26  ;;  %v546_v41 = vld [vmem:[%s2117_s28 + $0x100] sm:$0xff] }
  0x5f   : > { %1545 = vmatprep.subr.bf16.mxu1 %v1544_v55  ;;  %1601 = vmatprep.subr.bf16.mxu0 %v1600_v22  ;;  %v1606_v39 = vpack.c.bf16 %v592_v35, %v590_v34  ;;  %v1560_v40 = vpack.c.bf16 %v549_v37, %v547_v36  ;;  %v548_v42 = vld [vmem:[%s2117_s28 + $0x110] sm:$0xff]  ;;  %v551_v43 = vld [vmem:[%s2117_s28 + $0x128] sm:$0xff]  ;;  %v553_v44 = vld [vmem:[%s2117_s28 + $0x138] sm:$0xff] }
  0x60   : > { %v595_v45 = vld [vmem:[%s2117_s28 + $0x288] sm:$0xff]  ;;  %v1562_v46 = vpack.c.bf16 %v548_v42, %v546_v41  ;;  %v1564_v47 = vpack.c.bf16 %v553_v44, %v551_v43  ;;  %v550_v48 = vld [vmem:[%s2117_s28 + $0x120] sm:$0xff]  ;;  %v552_v49 = vld [vmem:[%s2117_s28 + $0x130] sm:$0xff] }
  0x61   : > { %v594_v50 = vld [vmem:[%s2117_s28 + $0x280] sm:$0xff]  ;;  %v555_v51 = vld [vmem:[%s2117_s28 + $0x148] sm:$0xff]  ;;  %v557_v52 = vld [vmem:[%s2117_s28 + $0x158] sm:$0xff]  ;;  %v1566_v54 = vpack.c.bf16 %v552_v49, %v550_v48 }
  0x62   : > { %1547 = vmatpush1.bf16.msra.mxu1 %v1546_v60  ;;  %1603 = vmatpush1.bf16.msra.mxu0 %v1602_v28  ;;  %v468_v53 = vld [vmem:[%s2593_s1 + $0x10] sm:$0xff]  ;;  %v1568_v55 = vpack.c.bf16 %v557_v52, %v555_v51  ;;  %v559_v58 = vld [vmem:[%s2117_s28 + $0x168] sm:$0xff]  ;;  %v561_v59 = vld [vmem:[%s2117_s28 + $0x178] sm:$0xff] }
  0x63   : > { %1549 = vmatprep.subr.bf16.mxu1 %v1548_v0  ;;  %1605 = vmatprep.subr.bf16.mxu0 %v1604_v33  ;;  %v554_v56 = vld [vmem:[%s2117_s28 + $0x140] sm:$0xff]  ;;  %v556_v57 = vld [vmem:[%s2117_s28 + $0x150] sm:$0xff]  ;;  %v471_v60 = vld [vmem:[%s2593_s1 + $0x28] sm:$0xff]  ;;  %v1572_v0 = vpack.c.bf16 %v561_v59, %v559_v58 }
  0x64   : > { %v596_v61 = vld [vmem:[%s2594_s2] sm:$0xff]  ;;  %v1570_v62 = vpack.c.bf16 %v556_v57, %v554_v56  ;;  %v598_v63 = vld [vmem:[%s2594_s2 + $0x10] sm:$0xff]  ;;  %v597_v3 = vld [vmem:[%s2594_s2 + $0x8] sm:$0xff] }
  0x65   : > { %614 = vperm.xlu0 %1700, %v596_v61   ;;  %v558_v1 = vld [vmem:[%s2117_s28 + $0x160] sm:$0xff]  ;;  %v560_v2 = vld [vmem:[%s2117_s28 + $0x170] sm:$0xff]  ;;  %v563_v4 = vld [vmem:[%s2117_s28 + $0x188] sm:$0xff]  ;;  %624 = vperm.xlu1 %1701, %v598_v63  }
  0x66   : > { %1551 = vmatpush1.bf16.msra.mxu1 %v1550_v10  ;;  %1607 = vmatpush1.bf16.msra.mxu0 %v1606_v39  ;;  %v565_v5 = vld [vmem:[%s2117_s28 + $0x198] sm:$0xff]  ;;  %v474_v6 = vld [vmem:[%s2593_s1 + $0x40] sm:$0xff]  ;;  %v1574_v8 = vpack.c.bf16 %v560_v2, %v558_v1  ;;  %v567_v13 = vld [vmem:[%s2117_s28 + $0x1a8] sm:$0xff] }
  0x67   : > { %1553 = vmatprep.subr.bf16.mxu1 %v1552_v15  ;;  %918 = vmatprep.subr.mxu0 %v595_v45  ;;  %v599_v7 = vld [vmem:[%s2594_s2 + $0x18] sm:$0xff]  ;;  %v1576_v9 = vpack.c.bf16 %v565_v5, %v563_v4  ;;  %v562_v10 = vld [vmem:[%s2117_s28 + $0x180] sm:$0xff]  ;;  %v564_v11 = vld [vmem:[%s2117_s28 + $0x190] sm:$0xff] }
  0x68   : > { %v600_v12 = vld [vmem:[%s2594_s2 + $0x20] sm:$0xff]  ;;  %v569_v14 = vld [vmem:[%s2117_s28 + $0x1b8] sm:$0xff]  ;;  %v1578_v17 = vpack.c.bf16 %v564_v11, %v562_v10  ;;  %v602_v21 = vld [vmem:[%s2594_s2 + $0x30] sm:$0xff] }
  0x69   : > { %619 = vperm.xlu0 %1700, %v597_v3   ;;  %v477_v15 = vld [vmem:[%s2593_s1 + $0x58] sm:$0xff]  ;;  %629 = vperm.xlu1 %1701, %v599_v7   ;;  %v601_v16 = vld [vmem:[%s2594_s2 + $0x28] sm:$0xff]  ;;  %v1580_v18 = vpack.c.bf16 %v569_v14, %v567_v13  ;;  %v566_v19 = vld [vmem:[%s2117_s28 + $0x1a0] sm:$0xff] }
  0x6a   : > { %1555 = vmatpush1.bf16.msra.mxu1 %v1554_v25  ;;  %919 = vmatpush1.msra.mxu0 %v594_v50  ;;  %v568_v20 = vld [vmem:[%s2117_s28 + $0x1b0] sm:$0xff]  ;;  %v571_v22 = vld [vmem:[%s2117_s28 + $0x1c8] sm:$0xff]  ;;  %v573_v23 = vld [vmem:[%s2117_s28 + $0x1d8] sm:$0xff] }
  0x6b   : > { %1557 = vmatprep.subr.bf16.mxu1 %v1556_v31  ;;  %1476 = vmatmul.mubr.msk.f32.vlgmr.msra.gmra.mrb[0].mxu0 %vm692_vm0, %v468_v53  ;;  %v480_v24 = vld [vmem:[%s2593_s1 + $0x70] sm:$0xff]  ;;  %v603_v25 = vld [vmem:[%s2594_s2 + $0x38] sm:$0xff]  ;;  %v1582_v26 = vpack.c.bf16 %v568_v20, %v566_v19  ;;  %v1584_v28 = vpack.c.bf16 %v573_v23, %v571_v22  ;;  %v604_v31 = vld [vmem:[%s2594_s2 + $0x40] sm:$0xff] }
  0x6c   : > { %972 = vmatprep.mubr.f32.mxu0 %v1854_v27  ;;  %v570_v29 = vld [vmem:[%s2117_s28 + $0x1c0] sm:$0xff]  ;;  %v572_v30 = vld [vmem:[%s2117_s28 + $0x1d0] sm:$0xff]  ;;  %v575_v32 = vld [vmem:[%s2117_s28 + $0x1e8] sm:$0xff] }
  0x6d   : > { %634 = vperm.xlu0 %1700, %v600_v12   ;;  %639 = vperm.xlu1 %1701, %v601_v16   ;;  %v577_v33 = vld [vmem:[%s2117_s28 + $0x1f8] sm:$0xff]  ;;  %v1586_v36 = vpack.c.bf16 %v572_v30, %v570_v29  ;;  %v576_v39 = vld [vmem:[%s2117_s28 + $0x1f0] sm:$0xff] }
  0x6e   : > { %1559 = vmatpush1.bf16.msra.mxu1 %v1558_v38  ;;  %v483_v34 = vld [vmem:[%s2593_s1 + $0x88] sm:$0xff]  ;;  %v1588_v37 = vpack.c.bf16 %v577_v33, %v575_v32  ;;  %v574_v38 = vld [vmem:[%s2117_s28 + $0x1e0] sm:$0xff]  ;;  %v607_v42 = vld [vmem:[%s2594_s2 + $0x58] sm:$0xff]  ;;  %s1526_s28 = sshll.u32 (%p1921_p5), %s1902_s21, 4 }
  0x6f   : > { %1561 = vmatprep.subr.bf16.mxu1 %v1560_v40  ;;  %1477 = vmatmul.mubr.msk.f32.gmra.mrb[2].mxu0 %vm692_vm0, %v471_v60  ;;  %v605_v35 = vld [vmem:[%s2594_s2 + $0x48] sm:$0xff]  ;;  %v606_v40 = vld [vmem:[%s2594_s2 + $0x50] sm:$0xff]  ;;  %v486_v41 = vld [vmem:[%s2593_s1 + $0xa0] sm:$0xff]  ;;  %v1590_v43 = vpack.c.bf16 %v576_v39, %v574_v38  ;;  %s1292_s9 = scalar_lea.vmem (%p1921_p5), %s2596_s4, %s1526_s28 }
  0x70   : > { %978 = vmatprep.mubr.f32.mxu0 %v1854_v27  ;;  %v608_v44 = vld [vmem:[%s2594_s2 + $0x60] sm:$0xff]  ;;  %v489_v45 = vld [vmem:[%s2593_s1 + $0xb8] sm:$0xff]  ;;  %v610_v49 = vld [vmem:[%s2594_s2 + $0x70] sm:$0xff] }
  0x71   : > { %644 = vperm.xlu0 %1700, %v602_v21   ;;  %649 = vperm.xlu1 %1701, %v603_v25   ;;  %v470_v48 = vld [vmem:[%s2593_s1 + $0x20] sm:$0xff]  ;;  %v492_v50 = vld [vmem:[%s2593_s1 + $0xd0] sm:$0xff]  ;;  %v611_v51 = vld [vmem:[%s2594_s2 + $0x78] sm:$0xff] }
  0x72   : > { %1563 = vmatpush1.bf16.msra.mxu1 %v1562_v46  ;;  %v609_v46 = vld [vmem:[%s2594_s2 + $0x68] sm:$0xff]  ;;  %v469_v52 = vld [vmem:[%s2593_s1 + $0x18] sm:$0xff]  ;;  %v476_v56 = vld [vmem:[%s2593_s1 + $0x50] sm:$0xff] }
  0x73   : > { %1565 = vmatprep.subr.bf16.mxu1 %v1564_v47  ;;  %1478 = vmatmul.mubr.msk.f32.gmra.mrb[4].mxu0 %vm692_vm0, %v474_v6  ;;  %v466_v47 = vld [vmem:[%s2593_s1] sm:$0xff]  ;;  %v473_v53 = vld [vmem:[%s2593_s1 + $0x38] sm:$0xff]  ;;  %v475_v58 = vld [vmem:[%s2593_s1 + $0x48] sm:$0xff] }
  0x74   : > { %984 = vmatprep.mubr.f32.mxu0 %v1854_v27  ;;  %v498_v57 = vld [vmem:[%s2593_s1 + $0x100] sm:$0xff]  ;;  %v479_v59 = vld [vmem:[%s2593_s1 + $0x68] sm:$0xff]  ;;  %v501_v60 = vld [vmem:[%s2593_s1 + $0x118] sm:$0xff] }
  0x75   : > { %654 = vperm.xlu0 %1700, %v604_v31   ;;  %659 = vperm.xlu1 %1701, %v605_v35   ;;  %v478_v61 = vld [vmem:[%s2593_s1 + $0x60] sm:$0xff]  ;;  %v504_v63 = vld [vmem:[%s2593_s1 + $0x130] sm:$0xff]  ;;  %v485_v1 = vld [vmem:[%s2593_s1 + $0x98] sm:$0xff] }
  0x76   : > { %1567 = vmatpush1.bf16.msra.mxu1 %v1566_v54  ;;  %v495_v54 = vld [vmem:[%s2593_s1 + $0xe8] sm:$0xff]  ;;  %v484_v3 = vld [vmem:[%s2593_s1 + $0x90] sm:$0xff]  ;;  %v510_v5 = vld [vmem:[%s2593_s1 + $0x160] sm:$0xff] }
  0x77   : > { %1569 = vmatprep.subr.bf16.mxu1 %v1568_v55  ;;  %1479 = vmatmul.mubr.msk.f32.gmra.mrb[6].mxu0 %vm692_vm0, %v477_v15  ;;  %v472_v55 = vld [vmem:[%s2593_s1 + $0x30] sm:$0xff]  ;;  %v507_v2 = vld [vmem:[%s2593_s1 + $0x148] sm:$0xff]  ;;  %v494_v10 = vld [vmem:[%s2593_s1 + $0xe0] sm:$0xff] }
  0x78   : > { %990 = vmatprep.mubr.f32.mxu0 %v1854_v27  ;;  %v488_v4 = vld [vmem:[%s2593_s1 + $0xb0] sm:$0xff]  ;;  %v487_v6 = vld [vmem:[%s2593_s1 + $0xa8] sm:$0xff]  ;;  %v497_v11 = vld [vmem:[%s2593_s1 + $0xf8] sm:$0xff] }
  0x79   : > { %664 = vperm.xlu0 %1700, %v606_v40   ;;  %669 = vperm.xlu1 %1701, %v607_v42   ;;  %v491_v7 = vld [vmem:[%s2593_s1 + $0xc8] sm:$0xff]  ;;  %v496_v12 = vld [vmem:[%s2593_s1 + $0xf0] sm:$0xff]  ;;  %v502_v16 = vld [vmem:[%s2593_s1 + $0x120] sm:$0xff] }
  0x7a   : > { %1571 = vmatpush1.bf16.msra.mxu1 %v1570_v62  ;;  %v482_v62 = vld [vmem:[%s2593_s1 + $0x80] sm:$0xff]  ;;  %v500_v13 = vld [vmem:[%s2593_s1 + $0x110] sm:$0xff]  ;;  %v499_v14 = vld [vmem:[%s2593_s1 + $0x108] sm:$0xff] }
  0x7b   : > { %1573 = vmatprep.subr.bf16.mxu1 %v1572_v0  ;;  %1480 = vmatmul.mubr.msk.f32.gmra.mrb[8].mxu0 %vm692_vm0, %v480_v24  ;;  %v481_v0 = vld [vmem:[%s2593_s1 + $0x78] sm:$0xff]  ;;  %v503_v15 = vld [vmem:[%s2593_s1 + $0x128] sm:$0xff]  ;;  %v508_v20 = vld [vmem:[%s2593_s1 + $0x150] sm:$0xff] }
  0x7c   : > { %996 = vmatprep.mubr.f32.mxu0 %v1854_v27  ;;  %v509_v19 = vld [vmem:[%s2593_s1 + $0x158] sm:$0xff]  ;;  %v512_v21 = vld [vmem:[%s2593_s1 + $0x170] sm:$0xff]  ;;  %v511_v22 = vld [vmem:[%s2593_s1 + $0x168] sm:$0xff] }
  0x7d   : > { %674 = vperm.xlu0 %1700, %v608_v44   ;;  %679 = vperm.xlu1 %1701, %v609_v46  }
  0x7e   : > { %1575 = vmatpush1.bf16.msra.mxu1 %v1574_v8  ;;  %v513_v8 = vld [vmem:[%s2593_s1 + $0x178] sm:$0xff] }
  0x7f   : > { %1577 = vmatprep.subr.bf16.mxu1 %v1576_v9  ;;  %1481 = vmatmul.mubr.msk.f32.gmra.mrb[10].mxu0 %vm692_vm0, %v483_v34  ;;  %v490_v9 = vld [vmem:[%s2593_s1 + $0xc0] sm:$0xff] }
  0x80   : > { %1002 = vmatprep.mubr.f32.mxu0 %v1854_v27 }
  0x81   : > { %684 = vperm.xlu0 %1700, %v610_v49   ;;  %689 = vperm.xlu1 %1701, %v611_v51  }
  0x82   : > { %1579 = vmatpush1.bf16.msra.mxu1 %v1578_v17  ;;  %v506_v17 = vld [vmem:[%s2593_s1 + $0x140] sm:$0xff] }
  0x83   : > { %1581 = vmatprep.subr.bf16.mxu1 %v1580_v18  ;;  %1482 = vmatmul.mubr.msk.f32.gmra.mrb[12].mxu0 %vm692_vm0, %v486_v41  ;;  %v505_v18 = vld [vmem:[%s2593_s1 + $0x138] sm:$0xff] }
  0x84   : > { %1008 = vmatprep.mubr.f32.mxu0 %v1854_v27 }
  0x86   : > { %1583 = vmatpush1.bf16.msra.mxu1 %v1582_v26 }
  0x87   : > { %1585 = vmatprep.subr.bf16.mxu1 %v1584_v28  ;;  %1483 = vmatmul.mubr.msk.f32.gmra.mrb[14].mxu0 %vm692_vm0, %v489_v45 }
  0x88   : > { %1014 = vmatprep.mubr.f32.mxu0 %v1854_v27 }
  0x8a   : > { %1587 = vmatpush1.bf16.msra.mxu1 %v1586_v36 }
  0x8b   : > { %1589 = vmatprep.subr.bf16.mxu1 %v1588_v37  ;;  %1484 = vmatmul.mubr.msk.f32.gmra.mrb[16].mxu0 %vm692_vm0, %v492_v50 }
  0x8c   : > { %1020 = vmatprep.mubr.f32.mxu0 %v1854_v27 }
  0x8e   : > { %1591 = vmatpush1.bf16.msra.mxu1 %v1590_v43 }
  0x8f   : > { %1485 = vmatmul.mubr.msk.f32.gmra.mrb[18].mxu0 %vm692_vm0, %v495_v54 }
  0x90   : > { %1026 = vmatprep.mubr.f32.mxu0 %v1854_v27 }
  0x91   : > { %806 = vmatmul.mubr.f32.vlgmr.msra.gmra.mrb[0].mxu1 %v466_v47 }
  0x92   : > { %811 = vmatprep.mubr.f32.mxu1 %v470_v48 }
  0x93   : > { %1486 = vmatmul.mubr.msk.f32.gmra.mrb[20].mxu0 %vm692_vm0, %v498_v57 }
  0x94   : > { %1032 = vmatprep.mubr.f32.mxu0 %v1854_v27 }
  0x95   : > { %812 = vmatmul.mubr.f32.gmra.mrb[2].mxu1 %v469_v52 }
  0x96   : > { %817 = vmatprep.mubr.f32.mxu1 %v473_v53 }
  0x97   : > { %1487 = vmatmul.mubr.msk.f32.gmra.mrb[22].mxu0 %vm692_vm0, %v501_v60 }
  0x98   : > { %1038 = vmatprep.mubr.f32.mxu0 %v1854_v27 }
  0x99   : > { %818 = vmatmul.mubr.f32.gmra.mrb[4].mxu1 %v472_v55 }
  0x9a   : > { %823 = vmatprep.mubr.f32.mxu1 %v476_v56 }
  0x9b   : > { %1488 = vmatmul.mubr.msk.f32.gmra.mrb[24].mxu0 %vm692_vm0, %v504_v63 }
  0x9c   : > { %1044 = vmatprep.mubr.f32.mxu0 %v1854_v27 }
  0x9d   : > { %824 = vmatmul.mubr.f32.gmra.mrb[6].mxu1 %v475_v58 }
  0x9e   : > { %829 = vmatprep.mubr.f32.mxu1 %v479_v59 }
  0x9f   : > { %1489 = vmatmul.mubr.msk.f32.gmra.mrb[26].mxu0 %vm692_vm0, %v507_v2 }
  0xa0   : > { %1050 = vmatprep.mubr.f32.mxu0 %v1854_v27 }
  0xa1   : > { %830 = vmatmul.mubr.f32.gmra.mrb[8].mxu1 %v478_v61 }
  0xa2   : > { %835 = vmatprep.mubr.f32.mxu1 %v482_v62 }
  0xa3   : > { %1490 = vmatmul.mubr.msk.f32.gmra.mrb[28].mxu0 %vm692_vm0, %v510_v5 }
  0xa4   : > { %1056 = vmatprep.mubr.f32.mxu0 %v1854_v27  ;;  %v493_v27 = vld [vmem:[%s2593_s1 + $0xd8] sm:$0xff] }
  0xa5   : > { %836 = vmatmul.mubr.f32.gmra.mrb[10].mxu1 %v481_v0 }
  0xa6   : > { %841 = vmatprep.mubr.f32.mxu1 %v485_v1 }
  0xa7   : > { %1491 = vmatmul.mubr.msk.f32.gmra.mrb[30].mxu0 %vm692_vm0, %v513_v8 }
  0xa9   : > { %842 = vmatmul.mubr.f32.gmra.mrb[12].mxu1 %v484_v3 }
  0xaa   : > { %847 = vmatprep.mubr.f32.mxu1 %v488_v4 }
  0xad   : > { %848 = vmatmul.mubr.f32.gmra.mrb[14].mxu1 %v487_v6 }
  0xae   : > { %853 = vmatprep.mubr.f32.mxu1 %v491_v7 }
  0xb1   : > { %854 = vmatmul.mubr.f32.gmra.mrb[16].mxu1 %v490_v9 }
  0xb2   : > { %859 = vmatprep.mubr.f32.mxu1 %v494_v10 }
  0xb5   : > { %860 = vmatmul.mubr.f32.gmra.mrb[18].mxu1 %v493_v27 }
  0xb6   : > { %865 = vmatprep.mubr.f32.mxu1 %v497_v11 }
  0xb9   : > { %866 = vmatmul.mubr.f32.gmra.mrb[20].mxu1 %v496_v12 }
  0xba   : > { %871 = vmatprep.mubr.f32.mxu1 %v500_v13 }
  0xbd   : > { %872 = vmatmul.mubr.f32.gmra.mrb[22].mxu1 %v499_v14 }
  0xbe   : > { %877 = vmatprep.mubr.f32.mxu1 %v503_v15 }
  0xc1   : > { %878 = vmatmul.mubr.f32.gmra.mrb[24].mxu1 %v502_v16 }
  0xc2   : > { %883 = vmatprep.mubr.f32.mxu1 %v506_v17 }
  0xc5   : > { %884 = vmatmul.mubr.f32.gmra.mrb[26].mxu1 %v505_v18 }
  0xc6   : > { %889 = vmatprep.mubr.f32.mxu1 %v509_v19 }
  0xc9   : > { %890 = vmatmul.mubr.f32.gmra.mrb[28].mxu1 %v508_v20 }
  0xca   : > { %895 = vmatprep.mubr.f32.mxu1 %v512_v21 }
  0xcd   : > { %896 = vmatmul.mubr.f32.gmra.mrb[30].mxu1 %v511_v22 }
  0xe4   : > { %v615_v38 = vpop.permute.xlu0 %614  ;;  %v625_v55 = vpop.permute.xlu1 %624 }
  0xe8   : > { %v620_v45 = vpop.permute.xlu0 %619  ;;  %v630_v6 = vpop.permute.xlu1 %629 }
  0xec   : > { %v635_v16 = vpop.permute.xlu0 %634 }
 0x13e   : > { %v968_v23 = vpop.f32.mrb[0].mxu0 }
 0x13f   : > { %v970_v24 = vpop.f32.mrb[1].mxu0 }
 0x142   : > { %v974_v25 = vpop.f32.mrb[2].mxu0 }
 0x143   : > { %v976_v26 = vpop.f32.mrb[3].mxu0 }
 0x146   : > { %v980_v28 = vpop.f32.mrb[4].mxu0 }
 0x147   : > { %v982_v29 = vpop.f32.mrb[5].mxu0 }
 0x14a   : > { %v986_v30 = vpop.f32.mrb[6].mxu0 }
 0x14b   : > { %v988_v31 = vpop.f32.mrb[7].mxu0 }
 0x14e   : > { %v2421_v32 = vpop.f32.mrb[8].mxu0 }
 0x14f   : > { %v2423_v33 = vpop.f32.mrb[9].mxu0 }
 0x152   : > { %v2425_v34 = vpop.f32.mrb[10].mxu0 }
 0x153   : > { %v2427_v35 = vpop.f32.mrb[11].mxu0 }
 0x156   : > { %v2429_v36 = vpop.f32.mrb[12].mxu0 }
 0x157   : > { %v2431_v37 = vpop.f32.mrb[13].mxu0 }
 0x15a   : > { %v2433_v39 = vpop.f32.mrb[14].mxu0 }
 0x15b   : > { %v2435_v40 = vpop.f32.mrb[15].mxu0 }
 0x15e   : > { %v2437_v46 = vpop.f32.mrb[16].mxu0 }
 0x15f   : > { %v2439_v48 = vpop.f32.mrb[17].mxu0 }
 0x162   : > { %v2441_v57 = vpop.f32.mrb[18].mxu0 }
 0x163   : > { %v2443_v59 = vpop.f32.mrb[19].mxu0 }
 0x164   : > { %v807_v41 = vpop.f32.mrb[0].mxu1 }
 0x165   : > { %v808_v42 = vadd.f32 %v807_v41, %v615_v38  ;;  %v809_v43 = vpop.f32.mrb[1].mxu1  ;;  %v640_v41 = vpop.permute.xlu1 %639 }
 0x166   : > { %v810_v44 = vadd.f32 %v809_v43, %v615_v38  ;;  %v2445_v3 = vpop.f32.mrb[20].mxu0 }
 0x167   : > { %v969_v47 = vadd.f32 %v968_v23, %v808_v42  ;;  %v2447_v5 = vpop.f32.mrb[21].mxu0 }
 0x168   : > { %v971_v49 = vadd.f32 %v970_v24, %v810_v44  ;;  %v813_v50 = vpop.f32.mrb[2].mxu1 }
 0x169   : > { %v1492_v51 = vmul.f32 -1.442695, %v969_v47  ;;  %v814_v52 = vadd.f32 %v813_v50, %v620_v45  ;;  %v815_v53 = vpop.f32.mrb[3].mxu1 }
 0x16a   : > { %v1493_v54 = vmul.f32 -1.442695, %v971_v49  ;;  %v816_v56 = vadd.f32 %v815_v53, %v620_v45  ;;  %v2449_v13 = vpop.f32.mrb[22].mxu0 }
 0x16b   : > { %1702 = vpow2.f32 %v1492_v51  ;;  %v975_v58 = vadd.f32 %v974_v25, %v814_v52  ;;  %v2451_v15 = vpop.f32.mrb[23].mxu0 }
 0x16c   : > { %1704 = vpow2.f32 %v1493_v54  ;;  %v977_v60 = vadd.f32 %v976_v26, %v816_v56  ;;  %v819_v61 = vpop.f32.mrb[4].mxu1 }
 0x16d   : > { %v1494_v62 = vmul.f32 -1.442695, %v975_v58  ;;  %v820_v63 = vadd.f32 %v819_v61, %v625_v55  ;;  %v821_v0 = vpop.f32.mrb[5].mxu1 }
 0x16e   : > { %v1495_v1 = vmul.f32 -1.442695, %v977_v60  ;;  %v822_v2 = vadd.f32 %v821_v0, %v625_v55  ;;  %v645_v55 = vpop.permute.xlu0 %644 }
 0x16f   : > { %1706 = vpow2.f32 %v1494_v62  ;;  %v981_v4 = vadd.f32 %v980_v28, %v820_v63  ;;  %v2453_v28 = vpop.f32.mrb[24].mxu0 }
 0x170   : > { %1708 = vpow2.f32 %v1495_v1  ;;  %v983_v7 = vadd.f32 %v982_v29, %v822_v2  ;;  %v825_v8 = vpop.f32.mrb[6].mxu1 }
 0x171   : > { %v1496_v9 = vmul.f32 -1.442695, %v981_v4  ;;  %v826_v10 = vadd.f32 %v825_v8, %v630_v6  ;;  %v827_v27 = vpop.f32.mrb[7].mxu1  ;;  %v650_v8 = vpop.permute.xlu1 %649 }
 0x172   : > { %v1497_v11 = vmul.f32 -1.442695, %v983_v7  ;;  %v828_v12 = vadd.f32 %v827_v27, %v630_v6 }
 0x173   : > { %1710 = vpow2.f32 %v1496_v9  ;;  %v987_v14 = vadd.f32 %v986_v30, %v826_v10  ;;  %v2456_v30 = vpop.f32.mrb[25].mxu0 }
 0x174   : > { %1712 = vpow2.f32 %v1497_v11  ;;  %v989_v17 = vadd.f32 %v988_v31, %v828_v12  ;;  %v831_v18 = vpop.f32.mrb[8].mxu1  ;;  %v2459_v53 = vpop.f32.mrb[26].mxu0 }
 0x175   : > { %v1703_v19 = vpop.eup %1702  ;;  %v1498_v20 = vmul.f32 -1.442695, %v987_v14  ;;  %v832_v21 = vadd.f32 %v831_v18, %v635_v16  ;;  %v833_v22 = vpop.f32.mrb[9].mxu1 }
 0x176   : > { %v1705_v23 = vpop.eup %1704  ;;  %v1087_v24 = vadd.f32 1.0, %v1703_v19  ;;  %v1499_v25 = vmul.f32 -1.442695, %v989_v17  ;;  %v834_v26 = vadd.f32 %v833_v22, %v635_v16  ;;  %v2462_v54 = vpop.f32.mrb[27].mxu0 }
 0x177   : > { %1714 = vpow2.f32 %v1498_v20  ;;  %v993_v29 = vadd.f32 %v2421_v32, %v832_v21  ;;  %v1088_v38 = vadd.f32 1.0, %v1705_v23  ;;  %v2465_v6 = vpop.f32.mrb[28].mxu0  ;;  %v655_v22 = vpop.permute.xlu0 %654 }
 0x178   : > { %v995_v31 = vadd.f32 %v2423_v33, %v834_v26  ;;  %v837_v42 = vpop.f32.mrb[10].mxu1  ;;  %1716 = vrcp.f32 %v1087_v24  ;;  %v2468_v7 = vpop.f32.mrb[29].mxu0 }
 0x179   : > { %v1707_v43 = vpop.eup %1706  ;;  %v1500_v44 = vmul.f32 -1.442695, %v993_v29  ;;  %v838_v45 = vadd.f32 %v837_v42, %v640_v41  ;;  %v839_v47 = vpop.f32.mrb[11].mxu1  ;;  %1718 = vpow2.f32 %v1499_v25 }
 0x17a   : > { %v1709_v49 = vpop.eup %1708  ;;  %v1089_v50 = vadd.f32 1.0, %v1707_v43  ;;  %v1501_v51 = vmul.f32 -1.442695, %v995_v31  ;;  %v840_v52 = vadd.f32 %v839_v47, %v640_v41  ;;  %v2471_v19 = vpop.f32.mrb[30].mxu0 }
 0x17b   : > { %1720 = vpow2.f32 %v1500_v44  ;;  %v999_v32 = vadd.f32 %v2425_v34, %v838_v45  ;;  %v1090_v33 = vadd.f32 1.0, %v1709_v49  ;;  %v2476_v21 = vpop.f32.mrb[31].mxu0 }
 0x17c   : > { %1722 = vrcp.f32 %v1088_v38  ;;  %v1001_v56 = vadd.f32 %v2427_v35, %v840_v52  ;;  %v843_v58 = vpop.f32.mrb[12].mxu1 }
 0x17d   : > { %v1711_v60 = vpop.eup %1710  ;;  %1724 = vrcp.f32 %v1089_v50  ;;  %v1502_v61 = vmul.f32 -1.442695, %v999_v32  ;;  %v844_v62 = vadd.f32 %v843_v58, %v645_v55  ;;  %v845_v63 = vpop.f32.mrb[13].mxu1 }
 0x17e   : > { %v1713_v0 = vpop.eup %1712  ;;  %v1091_v1 = vadd.f32 1.0, %v1711_v60  ;;  %1726 = vpow2.f32 %v1501_v51  ;;  %v1503_v2 = vmul.f32 -1.442695, %v1001_v56  ;;  %v846_v4 = vadd.f32 %v845_v63, %v645_v55 }
 0x17f   : > { %1728 = vpow2.f32 %v1502_v61  ;;  %v1005_v34 = vadd.f32 %v2429_v36, %v844_v62  ;;  %v1092_v35 = vadd.f32 1.0, %v1713_v0 }
 0x180   : > { %1730 = vrcp.f32 %v1090_v33  ;;  %v1007_v9 = vadd.f32 %v2431_v37, %v846_v4  ;;  %v849_v10 = vpop.f32.mrb[14].mxu1 }
 0x181   : > { %v1715_v27 = vpop.eup %1714  ;;  %1732 = vrcp.f32 %v1091_v1  ;;  %v1504_v11 = vmul.f32 -1.442695, %v1005_v34  ;;  %v850_v12 = vadd.f32 %v849_v10, %v650_v8  ;;  %v851_v14 = vpop.f32.mrb[15].mxu1 }
 0x182   : > { %v1093_v16 = vadd.f32 1.0, %v1715_v27  ;;  %1734 = vpow2.f32 %v1503_v2  ;;  %v1505_v17 = vmul.f32 -1.442695, %v1007_v9  ;;  %v852_v18 = vadd.f32 %v851_v14, %v650_v8  ;;  %v2473_v36 = vpop.eup %1716 }
 0x183   : > { %1736 = vpow2.f32 %v1504_v11  ;;  %v1011_v20 = vadd.f32 %v2433_v39, %v850_v12  ;;  %v1719_v37 = vpop.eup %1718 }
 0x184   : > { %1738 = vrcp.f32 %v1092_v35  ;;  %v1013_v23 = vadd.f32 %v2435_v40, %v852_v18  ;;  %v855_v24 = vpop.f32.mrb[16].mxu1  ;;  %v1094_v26 = vadd.f32 1.0, %v1719_v37  ;;  %v660_v40 = vpop.permute.xlu1 %659 }
 0x185   : > { %v1721_v25 = vpop.eup %1720  ;;  %1740 = vpow2.f32 %v1505_v17  ;;  %v1506_v29 = vmul.f32 -1.442695, %v1011_v20  ;;  %v856_v38 = vadd.f32 %v855_v24, %v655_v22  ;;  %v857_v41 = vpop.f32.mrb[17].mxu1 }
 0x186   : > { %v2479_v31 = vpop.eup %1722  ;;  %1742 = vrcp.f32 %v1093_v16  ;;  %v1135_v42 = vadd.f32 1.0, %v1721_v25  ;;  %v1507_v43 = vmul.f32 -1.442695, %v1013_v23  ;;  %v858_v39 = vadd.f32 %v857_v41, %v655_v22 }
 0x187   : > { %v2481_v44 = vpop.eup %1724  ;;  %1744 = vrcp.f32 %v1094_v26  ;;  %v1017_v45 = vadd.f32 %v2437_v46, %v856_v38 }
 0x188   : > { %v1727_v47 = vpop.eup %1726  ;;  %1746 = vrcp.f32 %v1135_v42  ;;  %v1019_v49 = vadd.f32 %v2439_v48, %v858_v39  ;;  %v861_v50 = vpop.f32.mrb[18].mxu1 }
 0x189   : > { %v1729_v51 = vpop.eup %1728  ;;  %v1136_v52 = vadd.f32 1.0, %v1727_v47  ;;  %1748 = vpow2.f32 %v1506_v29  ;;  %v862_v32 = vadd.f32 %v861_v50, %v660_v40  ;;  %v863_v33 = vpop.f32.mrb[19].mxu1 }
 0x18a   : > { %v2485_v55 = vpop.eup %1730  ;;  %v1137_v56 = vadd.f32 1.0, %v1729_v51  ;;  %1750 = vpow2.f32 %v1507_v43  ;;  %v864_v58 = vadd.f32 %v863_v33, %v660_v40  ;;  %v665_v48 = vpop.permute.xlu0 %664 }
 0x18b   : > { %v2487_v60 = vpop.eup %1732  ;;  %1752 = vrcp.f32 %v1136_v52  ;;  %v1023_v46 = vadd.f32 %v2441_v57, %v862_v32  ;;  %v670_v10 = vpop.permute.xlu1 %669 }
 0x18c   : > { %v1735_v61 = vpop.eup %1734  ;;  %1754 = vrcp.f32 %v1137_v56  ;;  %v1025_v62 = vadd.f32 %v2443_v59, %v864_v58  ;;  %v867_v63 = vpop.f32.mrb[20].mxu1  ;;  %v1218_v58 = vld [vmem:[%s2504_s18 + $0x18] sm:$0xff] }
 0x18d   : > { %v1737_v0 = vpop.eup %1736  ;;  %v1138_v1 = vadd.f32 1.0, %v1735_v61  ;;  %1756 = vtanh.f32 %v1017_v45  ;;  %v868_v2 = vadd.f32 %v867_v63, %v665_v48  ;;  %v869_v4 = vpop.f32.mrb[21].mxu1 }
 0x18e   : > { %v2495_v34 = vpop.eup %1738  ;;  %v1139_v35 = vadd.f32 1.0, %v1737_v0  ;;  %1758 = vtanh.f32 %v1019_v49  ;;  %v870_v8 = vadd.f32 %v869_v4, %v665_v48  ;;  %v675_v24 = vpop.permute.xlu0 %674  ;;  %v1217_v49 = vld [vmem:[%s2504_s18 + $0x10] sm:$0xff]  ;;  %v1219_v0 = vld [vmem:[%s2504_s18 + $0x20] sm:$0xff] }
 0x18f   : > { %v1741_v57 = vpop.eup %1740  ;;  %1760 = vrcp.f32 %v1138_v1  ;;  %v1029_v9 = vadd.f32 %v2445_v3, %v868_v2  ;;  %v1215_v3 = vld [vmem:[%s2504_s18] sm:$0xff]  ;;  %v1220_v1 = vld [vmem:[%s2504_s18 + $0x28] sm:$0xff] }
 0x190   : > { %v2498_v59 = vpop.eup %1742  ;;  %1762 = vrcp.f32 %v1139_v35  ;;  %v1140_v27 = vadd.f32 1.0, %v1741_v57  ;;  %v1031_v11 = vadd.f32 %v2447_v5, %v870_v8  ;;  %v873_v12 = vpop.f32.mrb[22].mxu1  ;;  %v1216_v5 = vld [vmem:[%s2504_s18 + $0x8] sm:$0xff] }
 0x191   : > { %v2501_v14 = vpop.eup %1744  ;;  %1764 = vtanh.f32 %v1023_v46  ;;  %v874_v16 = vadd.f32 %v873_v12, %v670_v10  ;;  %v875_v17 = vpop.f32.mrb[23].mxu1 }
 0x192   : > { %v1747_v18 = vpop.eup %1746  ;;  %1766 = vrcp.f32 %v1140_v27  ;;  %v876_v20 = vadd.f32 %v875_v17, %v670_v10 }
 0x193   : > { %v1749_v37 = vpop.eup %1748  ;;  %1768 = vtanh.f32 %v1025_v62  ;;  %v1035_v22 = vadd.f32 %v2449_v13, %v874_v16  ;;  %v1223_v45 = vmul.f32 %v1747_v18, %v1215_v3  ;;  %v1221_v3 = vld [vmem:[%s2504_s18 + $0x30] sm:$0xff] }
 0x194   : > { %v1751_v23 = vpop.eup %1750  ;;  %v1141_v25 = vadd.f32 1.0, %v1749_v37  ;;  %1770 = vtanh.f32 %v1029_v9  ;;  %v1037_v26 = vadd.f32 %v2451_v15, %v876_v20  ;;  %v879_v29 = vpop.f32.mrb[24].mxu1 }
 0x195   : > { %v1753_v38 = vpop.eup %1752  ;;  %v1142_v41 = vadd.f32 1.0, %v1751_v23  ;;  %1772 = vtanh.f32 %v1031_v11  ;;  %v880_v42 = vadd.f32 %v879_v29, %v675_v24  ;;  %v881_v43 = vpop.f32.mrb[25].mxu1 }
 0x196   : > { %v1755_v39 = vpop.eup %1754  ;;  %1774 = vrcp.f32 %v1141_v25  ;;  %v882_v47 = vadd.f32 %v881_v43, %v675_v24  ;;  %v1224_v40 = vmul.f32 %v1753_v38, %v1216_v5  ;;  %v680_v15 = vpop.permute.xlu1 %679  ;;  %v1222_v24 = vld [vmem:[%s2504_s18 + $0x38] sm:$0xff] }
 0x197   : > { %v1757_v13 = vpop.eup %1756  ;;  %1776 = vrcp.f32 %v1142_v41  ;;  %v1041_v50 = vadd.f32 %v2453_v28, %v880_v42  ;;  %v1225_v63 = vmul.f32 %v1755_v39, %v1217_v49  ;;  %v685_v9 = vpop.permute.xlu0 %684 }
 0x198   : > { %v1759_v51 = vpop.eup %1758  ;;  %v1231_v52 = vmul.f32 %v1757_v13, %v2473_v36  ;;  %1778 = vtanh.f32 %v1035_v22  ;;  %v1043_v32 = vadd.f32 %v2456_v30, %v882_v47  ;;  %v885_v33 = vpop.f32.mrb[26].mxu1 }
 0x199   : > { %v1761_v56 = vpop.eup %1760  ;;  %v1232_v46 = vmul.f32 %v1759_v51, %v2479_v31  ;;  %1780 = vtanh.f32 %v1037_v26  ;;  %v1508_v61 = vmul.f32 -1.442695, %v1041_v50  ;;  %v886_v48 = vadd.f32 %v885_v33, %v680_v15  ;;  %v887_v62 = vpop.f32.mrb[27].mxu1 }
 0x19a   : > { %v1763_v28 = vpop.eup %1762  ;;  %v1239_v2 = vadd.f32 %v1231_v52, %v1223_v45  ;;  %v1509_v4 = vmul.f32 -1.442695, %v1043_v32  ;;  %v888_v36 = vadd.f32 %v887_v62, %v680_v15  ;;  %v1226_v31 = vmul.f32 %v1761_v56, %v1218_v58 }
 0x19b   : > { %v1765_v35 = vpop.eup %1764  ;;  %v1240_v8 = vadd.f32 %v1232_v46, %v1224_v40  ;;  %1782 = vpow2.f32 %v1508_v61  ;;  %v1047_v30 = vadd.f32 %v2459_v53, %v886_v48  ;;  %v1227_v16 = vmul.f32 %v1763_v28, %v1219_v0  ;;  %v690_v40 = vpop.permute.xlu1 %689 }
 0x19c   : > { %v1767_v57 = vpop.eup %1766  ;;  %1247 = vst [vmem:[%s2520_s17] sm:$0xff] %v1239_v2  ;;  %v1233_v10 = vmul.f32 %v1765_v35, %v2481_v44  ;;  %v1049_v27 = vadd.f32 %v2462_v54, %v888_v36  ;;  %v891_v11 = vpop.f32.mrb[28].mxu1  ;;  %1784 = vpow2.f32 %v1509_v4 }
 0x19d   : > { %v1769_v12 = vpop.eup %1768  ;;  %v1228_v17 = vmul.f32 %v1767_v57, %v1220_v1  ;;  %1248 = vst [vmem:[%s2520_s17 + $0x8] sm:$0xff] %v1240_v8  ;;  %v1510_v53 = vmul.f32 -1.442695, %v1047_v30  ;;  %v892_v18 = vadd.f32 %v891_v11, %v685_v9  ;;  %v893_v20 = vpop.f32.mrb[29].mxu1 }
 0x19e   : > { %v1771_v37 = vpop.eup %1770  ;;  %v1241_v22 = vadd.f32 %v1233_v10, %v1225_v63  ;;  %v1234_v23 = vmul.f32 %v1769_v12, %v2485_v55  ;;  %v1511_v5 = vmul.f32 -1.442695, %v1049_v27  ;;  %v894_v25 = vadd.f32 %v893_v20, %v685_v9 }
 0x19f   : > { %v1773_v44 = vpop.eup %1772  ;;  %v1235_v54 = vmul.f32 %v1771_v37, %v2487_v60  ;;  %1786 = vpow2.f32 %v1510_v53  ;;  %v1053_v26 = vadd.f32 %v2465_v6, %v892_v18 }
 0x1a0   : > { %v1775_v29 = vpop.eup %1774  ;;  %1249 = vst [vmem:[%s2520_s17 + $0x10] sm:$0xff] %v1241_v22  ;;  %v1242_v38 = vadd.f32 %v1234_v23, %v1226_v31  ;;  %v1236_v41 = vmul.f32 %v1773_v44, %v2495_v34  ;;  %v897_v42 = vpop.f32.mrb[30].mxu1  ;;  %1788 = vpow2.f32 %v1511_v5  ;;  %v1055_v6 = vadd.f32 %v2468_v7, %v894_v25 }
 0x1a1   : > { %v1777_v43 = vpop.eup %1776  ;;  %v1229_v55 = vmul.f32 %v1775_v29, %v1221_v3  ;;  %v1243_v39 = vadd.f32 %v1235_v54, %v1227_v16  ;;  %v1512_v45 = vmul.f32 -1.442695, %v1053_v26  ;;  %v899_v47 = vpop.f32.mrb[31].mxu1  ;;  %1790 = vtanh.f32 %v1239_v2 }
 0x1a2   : > { %v1779_v60 = vpop.eup %1778  ;;  %v1230_v13 = vmul.f32 %v1777_v43, %v1222_v24  ;;  %1250 = vst [vmem:[%s2520_s17 + $0x18] sm:$0xff] %v1242_v38  ;;  %v1244_v49 = vadd.f32 %v1236_v41, %v1228_v17  ;;  %v898_v51 = vadd.f32 %v897_v42, %v690_v40  ;;  %v900_v15 = vadd.f32 %v899_v47, %v690_v40 }
 0x1a3   : > { %v1781_v50 = vpop.eup %1780  ;;  %1251 = vst [vmem:[%s2520_s17 + $0x20] sm:$0xff] %v1243_v39  ;;  %v1237_v34 = vmul.f32 %v1779_v60, %v2498_v59  ;;  %1792 = vtanh.f32 %v1240_v8  ;;  %v1513_v32 = vmul.f32 -1.442695, %v1055_v6 }
 0x1a4   : > { %1252 = vst [vmem:[%s2520_s17 + $0x28] sm:$0xff] %v1244_v49  ;;  %v1238_v52 = vmul.f32 %v1781_v50, %v2501_v14  ;;  %1794 = vpow2.f32 %v1512_v45  ;;  %v1059_v58 = vadd.f32 %v2471_v19, %v898_v51  ;;  %v1061_v7 = vadd.f32 %v2476_v21, %v900_v15 }
 0x1a5   : > { %v1783_v33 = vpop.eup %1782  ;;  %v1245_v56 = vadd.f32 %v1237_v34, %v1229_v55  ;;  %1796 = vpow2.f32 %v1513_v32 }
 0x1a6   : > { %v1246_v46 = vadd.f32 %v1238_v52, %v1230_v13  ;;  %v1191_v61 = vadd.f32 1.0, %v1783_v33  ;;  %1798 = vtanh.f32 %v1241_v22  ;;  %v1514_v59 = vmul.f32 -1.442695, %v1059_v58  ;;  %v1785_v48 = vpop.eup %1784 }
 0x1a7   : > { %1253 = vst [vmem:[%s2520_s17 + $0x30] sm:$0xff] %v1245_v56  ;;  %1800 = vtanh.f32 %v1242_v38  ;;  %v1192_v14 = vadd.f32 1.0, %v1785_v48  ;;  %v1515_v28 = vmul.f32 -1.442695, %v1061_v7 }
 0x1a8   : > { %1254 = vst [vmem:[%s2520_s17 + $0x38] sm:$0xff] %v1246_v46  ;;  %1802 = vrcp.f32 %v1191_v61 }
 0x1a9   : > { %v1787_v62 = vpop.eup %1786  ;;  %1804 = vpow2.f32 %v1514_v59 }
 0x1aa   : > { %v1193_v63 = vadd.f32 1.0, %v1787_v62  ;;  %v1789_v0 = vpop.eup %1788  ;;  %1806 = vrcp.f32 %v1192_v14 }
 0x1ab   : > { %v1194_v19 = vadd.f32 1.0, %v1789_v0  ;;  %v1791_v21 = vpop.eup %1790 }
 0x1ac   : > { %1808 = vrcp.f32 %v1193_v63 }
 0x1ad   : > { %1810 = vpow2.f32 %v1515_v28  ;;  %v1793_v1 = vpop.eup %1792 }
 0x1ae   : > { %1812 = vrcp.f32 %v1194_v19  ;;  %v1795_v2 = vpop.eup %1794 }
 0x1af   : > { %v1797_v4 = vpop.eup %1796  ;;  %1814 = vtanh.f32 %v1243_v39  ;;  %v1195_v36 = vadd.f32 1.0, %v1795_v2 }
 0x1b0   : > { %v1799_v35 = vpop.eup %1798  ;;  %1816 = vtanh.f32 %v1244_v49  ;;  %v1196_v8 = vadd.f32 1.0, %v1797_v4 }
 0x1b1   : > { %v1801_v30 = vpop.eup %1800  ;;  %1818 = vrcp.f32 %v1195_v36 }
 0x1b2   : > { %v1803_v57 = vpop.eup %1802  ;;  %1820 = vrcp.f32 %v1196_v8 }
 0x1b3   : > { %v1805_v31 = vpop.eup %1804  ;;  %v1263_v9 = vmul.f32 %v1803_v57, %v1791_v21  ;;  %1822 = vtanh.f32 %v1245_v56 }
 0x1b4   : > { %v1807_v10 = vpop.eup %1806  ;;  %v1197_v27 = vadd.f32 1.0, %v1805_v31 }
 0x1b5   : > { %1271 = vst [vmem:[%s2544_s6] sm:$0xff] %v1263_v9  ;;  %v1264_v12 = vmul.f32 %v1807_v10, %v1793_v1 }
 0x1b6   : > { %v1809_v11 = vpop.eup %1808  ;;  %1824 = vrcp.f32 %v1197_v27 }
 0x1b7   : > { %v1811_v16 = vpop.eup %1810  ;;  %v1265_v17 = vmul.f32 %v1809_v11, %v1799_v35  ;;  %1272 = vst [vmem:[%s2544_s6 + $0x8] sm:$0xff] %v1264_v12  ;;  %1826 = vtanh.f32 %v1246_v46 }
 0x1b8   : > { %v1813_v53 = vpop.eup %1812  ;;  %v1198_v18 = vadd.f32 1.0, %v1811_v16 }
 0x1b9   : > { %1273 = vst [vmem:[%s2544_s6 + $0x10] sm:$0xff] %v1265_v17  ;;  %v1266_v20 = vmul.f32 %v1813_v53, %v1801_v30  ;;  %v1815_v37 = vpop.eup %1814 }
 0x1ba   : > { %1828 = vrcp.f32 %v1198_v18  ;;  %v1817_v3 = vpop.eup %1816 }
 0x1bb   : > { %1274 = vst [vmem:[%s2544_s6 + $0x18] sm:$0xff] %v1266_v20  ;;  %v1819_v22 = vpop.eup %1818 }
 0x1bc   : > { %v1821_v23 = vpop.eup %1820  ;;  %v1267_v5 = vmul.f32 %v1819_v22, %v1815_v37  ;;  %v1305_v41 = vld [vmem:[%s2544_s6] sm:$0xff] (%p1921_p5) }
 0x1bd   : > { %v1268_v44 = vmul.f32 %v1821_v23, %v1817_v3  ;;  %v1823_v24 = vpop.eup %1822  ;;  %1306 = vst [vmem:[%s1292_s9] sm:$0xff] (%p1921_p5), %v1305_v41 }
 0x1be   : > { %1275 = vst [vmem:[%s2544_s6 + $0x20] sm:$0xff] %v1267_v5  ;;  %v1307_v42 = vld [vmem:[%s2544_s6 + $0x8] sm:$0xff] (%p1921_p5) }
 0x1bf   : > { %1276 = vst [vmem:[%s2544_s6 + $0x28] sm:$0xff] %v1268_v44  ;;  %1308 = vst [vmem:[%s1292_s9 + $0x8] sm:$0xff] (%p1921_p5), %v1307_v42 }
 0x1c0   : > { %v1825_v54 = vpop.eup %1824  ;;  %v1309_v43 = vld [vmem:[%s2544_s6 + $0x10] sm:$0xff] (%p1921_p5) }
 0x1c1   : > { %v1269_v25 = vmul.f32 %v1825_v54, %v1823_v24  ;;  %v1827_v26 = vpop.eup %1826  ;;  %1289 = sbr.rel (!%p1921_p5) target bundleno = 464 (0x1d0), region = 86  ;;  %1310 = vst [vmem:[%s1292_s9 + $0x20] sm:$0xff] (%p1921_p5), %v1309_v43 }
 0x1c2   : > { %v1311_v55 = vld [vmem:[%s2544_s6 + $0x18] sm:$0xff] (%p1921_p5) }
 0x1c3   : > { %1277 = vst [vmem:[%s2544_s6 + $0x30] sm:$0xff] %v1269_v25  ;;  %1312 = vst [vmem:[%s1292_s9 + $0x28] sm:$0xff] (%p1921_p5), %v1311_v55 }
 0x1c4   : > { %v1829_v29 = vpop.eup %1828 }
 0x1c5   : > { %v1270_v38 = vmul.f32 %v1829_v29, %v1827_v26  ;;  %v1313_v39 = vld [vmem:[%s2544_s6 + $0x20] sm:$0xff] (%p1921_p5) }
 0x1c6   : > { %v1315_v45 = vld [vmem:[%s2544_s6 + $0x28] sm:$0xff] (%p1921_p5)  ;;  %1314 = vst [vmem:[%s1292_s9 + $0x40] sm:$0xff] (%p1921_p5), %v1313_v39 }
 0x1c7   : > { %1278 = vst [vmem:[%s2544_s6 + $0x38] sm:$0xff] %v1270_v38  ;;  %1316 = vst [vmem:[%s1292_s9 + $0x48] sm:$0xff] (%p1921_p5), %v1315_v45 }
 0x1ca   : > { %v1317_v47 = vld [vmem:[%s2544_s6 + $0x30] sm:$0xff] }
 0x1cb   : > { %1318 = vst [vmem:[%s1292_s9 + $0x60] sm:$0xff] %v1317_v47 }
 0x1ce   : > { %v1319_v60 = vld [vmem:[%s2544_s6 + $0x38] sm:$0xff] }
 0x1cf   : > { %1320 = vst [vmem:[%s1292_s9 + $0x68] sm:$0xff] %v1319_v60 }
 0x1d0 PF: > { %1326 = sbr.rel (!%p1921_p5) target bundleno = 471 (0x1d7), region = 109  ;;  %s1527_s10 = sshll.u32 (%p1921_p5), %s1902_s21, 4  ;;  %v1342_v13 = vld [vmem:[%s2520_s17] sm:$0xff] (%p1921_p5)  ;;  %v1344_v40 = vld [vmem:[%s2520_s17 + $0x8] sm:$0xff] (%p1921_p5)  ;;  %v1346_v49 = vld [vmem:[%s2520_s17 + $0x10] sm:$0xff] (%p1921_p5) }
 0x1d1   : > { %s1329_s13 = scalar_lea.vmem (%p1921_p5), %s2597_s5, %s1527_s10  ;;  %v1348_v6 = vld [vmem:[%s2520_s17 + $0x18] sm:$0xff] (%p1921_p5)  ;;  %v1350_v50 = vld [vmem:[%s2520_s17 + $0x20] sm:$0xff] (%p1921_p5)  ;;  %v1352_v34 = vld [vmem:[%s2520_s17 + $0x28] sm:$0xff] (%p1921_p5) }
 0x1d2   : > { %1343 = vst [vmem:[%s1329_s13] sm:$0xff] (%p1921_p5), %v1342_v13  ;;  %1345 = vst [vmem:[%s1329_s13 + $0x8] sm:$0xff] (%p1921_p5), %v1344_v40  ;;  %v1354_v51 = vld [vmem:[%s2520_s17 + $0x30] sm:$0xff] (%p1921_p5)  ;;  %v1356_v15 = vld [vmem:[%s2520_s17 + $0x38] sm:$0xff] (%p1921_p5) }
 0x1d3   : > { %1347 = vst [vmem:[%s1329_s13 + $0x20] sm:$0xff] (%p1921_p5), %v1346_v49  ;;  %1349 = vst [vmem:[%s1329_s13 + $0x28] sm:$0xff] (%p1921_p5), %v1348_v6 }
 0x1d4   : > { %1351 = vst [vmem:[%s1329_s13 + $0x40] sm:$0xff] (%p1921_p5), %v1350_v50  ;;  %1353 = vst [vmem:[%s1329_s13 + $0x48] sm:$0xff] (%p1921_p5), %v1352_v34 }
 0x1d5   : > { %1355 = vst [vmem:[%s1329_s13 + $0x60] sm:$0xff] (%p1921_p5), %v1354_v51  ;;  %1357 = vst [vmem:[%s1329_s13 + $0x68] sm:$0xff] (%p1921_p5), %v1356_v15 }
 0x1d7 PF: > { %p13_p10 = scmp.ge.s32.totalorder %s1905_s22, 4   ;;  %s2600_s18 = smov %s1848_s19 }
 0x1d8   : > { %s2601_s19 = smov %s1915_s25  ;;  %s2602_s20 = smov %s1905_s22 }
 0x1d9   :  { %15 = sbr.rel (!%p13_p10) target bundleno = 2 (0x2), region = 183 }

</bundles_post_ra>
